<compile_context>
chip_gen: v5e
topology: v5e:2x2
jax: 0.10.0
libtpu: 0.0.40
codegen_flags: <defaults>
</compile_context>

<pallas_src>
import math

import jax
import jax.numpy as jnp
from jax.experimental import pallas as pl
from jax.experimental.pallas import tpu as pltpu

LANE = 128
SUBLANE = 8


def _pad_to(n, m):
    return ((n + m - 1) // m) * m


def _build_kernel(n_lin, mid, compute_dtype):
    """FP_AE eval-mode kernel for a model with n_lin Linear layers."""

    def kernel(*refs):
        # inputs : x, (w_i, b_i) for i in range(n_lin), s_mid, t_mid, wc, bc
        # outputs: out_x, out_np, out_fp
        x_ref = refs[0]
        lin = refs[1:1 + 2 * n_lin]
        s_ref, t_ref, wc_ref, bc_ref = refs[1 + 2 * n_lin:5 + 2 * n_lin]
        out_x_ref, out_np_ref, out_fp_ref = refs[5 + 2 * n_lin:8 + 2 * n_lin]

        h = x_ref[...]                                     # f32 activations
        for i in range(n_lin):
            w = lin[2 * i][...]                            # bf16 or f32
            b = lin[2 * i + 1][...]                        # f32
            h = jnp.dot(h.astype(compute_dtype), w,
                        preferred_element_type=jnp.float32) + b
            if i == n_lin - 1:
                break
            if i == mid - 1:
                # Bottleneck block: Tanh + explicit BN eval affine. Its output
                # is the fingerprint -> write fp and np here so the fingerprint
                # value is not kept live across the decoder layers.
                h = jnp.tanh(h)
                h = h * s_ref[...] + t_ref[...]
                out_fp_ref[...] = h
                out_np_ref[...] = (
                    jnp.dot(h.astype(compute_dtype), wc_ref[...],
                            preferred_element_type=jnp.float32) + bc_ref[...])
            else:
                # ReLU; this block's BN affine was folded into the next Linear
                # during prepare_params().
                h = jnp.maximum(h, 0.0)

        out_x_ref[...] = h

    return kernel


def prepare_params(params, layer_list, additional_outputs, *, use_bf16=True):
    """One-time preprocessing (hoisted out of the per-call path).

    Folds eval-BN affines into the following Linear (exact algebra), zero-pads
    every feature dim to a multiple of 128 lanes, and optionally casts the
    matmul weights to bf16.  Returns (arrays, meta).
    """
    assert len(layer_list) % 2 == 1 and len(layer_list) >= 3, \
        "FP_AE expects an odd-length layer_list"
    n_lin = len(layer_list) - 1
    mid = n_lin // 2
    f32 = jnp.float32
    wdt = jnp.bfloat16 if use_bf16 else f32

    # ---- fold BN eval affines into the following Linear (exact) ----
    ws, bs = [], []
    for i in range(n_lin):
        w = params[f"w{i}"].astype(f32)
        b = params[f"b{i}"].astype(f32).reshape(1, -1)
        if i > 0 and (i - 1) != mid - 1:
            s = params[f"s{i - 1}"].astype(f32).reshape(1, -1)
            t = params[f"t{i - 1}"].astype(f32).reshape(1, -1)
            b = t @ w + b                    # uses the un-scaled weight
            w = s.reshape(-1, 1) * w
        ws.append(w)
        bs.append(b)
    s_mid = params[f"s{mid - 1}"].astype(f32).reshape(1, -1)
    t_mid = params[f"t{mid - 1}"].astype(f32).reshape(1, -1)
    wc = params["wc"].astype(f32)
    bc = params["bc"].astype(f32).reshape(1, -1)

    # ---- zero-pad every feature dim to a multiple of 128 lanes ----
    in_dims = [_pad_to(layer_list[i], LANE) for i in range(n_lin)]
    out_dims = [_pad_to(layer_list[i + 1], LANE) for i in range(n_lin)]
    d_fp, d_fp_p = layer_list[mid], _pad_to(layer_list[mid], LANE)
    n_add, n_add_p = wc.shape[1], _pad_to(wc.shape[1], LANE)

    ws_p, bs_p = [], []
    for i in range(n_lin):
        wp = jnp.zeros((in_dims[i], out_dims[i]), f32)
        wp = wp.at[: ws[i].shape[0], : ws[i].shape[1]].set(ws[i]).astype(wdt)
        bp = jnp.zeros((1, out_dims[i]), f32).at[:, : bs[i].shape[1]].set(bs[i])
        ws_p.append(wp)
        bs_p.append(bp)
    s_p = jnp.ones((1, d_fp_p), f32).at[:, :d_fp].set(s_mid)
    t_p = jnp.zeros((1, d_fp_p), f32).at[:, :d_fp].set(t_mid)
    wc_p = jnp.zeros((d_fp_p, n_add_p), f32).at[:d_fp, :n_add].set(wc).astype(wdt)
    bc_p = jnp.zeros((1, n_add_p), f32).at[:, :n_add].set(bc)

    arrays = {"ws": tuple(ws_p), "bs": tuple(bs_p),
              "s": s_p, "t": t_p, "wc": wc_p, "bc": bc_p}
    meta = dict(n_lin=n_lin, mid=mid,
                d_in=layer_list[0], d_in_p=in_dims[0],
                d_out=layer_list[-1], d_out_p=out_dims[-1],
                d_fp=d_fp, d_fp_p=d_fp_p, n_add=n_add, n_add_p=n_add_p,
                compute_dtype=wdt)
    return arrays, meta


def fp_ae_forward(x, prepared, *, batch_tile=None, single_buffer_weights=True):
    """Eval-mode FP_AE forward as one batch-tiled Pallas call.

    `prepared` comes from prepare_params().  Returns (x_out, np_out,
    fingerprint) exactly like FP_AE.forward in eval mode.
    """
    arrays, meta = prepared
    n_lin, mid = meta["n_lin"], meta["mid"]
    compute_dtype = meta["compute_dtype"]
    f32 = jnp.float32

    B, d_in = x.shape
    assert d_in == meta["d_in"]
    d_in_p = meta["d_in_p"]
    d_out, d_out_p = meta["d_out"], meta["d_out_p"]
    d_fp, d_fp_p = meta["d_fp"], meta["d_fp_p"]
    n_add, n_add_p = meta["n_add"], meta["n_add_p"]

    # ---- batch tile: big enough to amortize per-step overhead / feed a tall
    # M into the MXU, but keep >=2 grid steps when possible so the 'parallel'
    # batch axis can be split across the 2 TensorCores on v7x.
    if batch_tile is None:
        B8 = max(SUBLANE, _pad_to(B, SUBLANE))
        TB = min(256, B8)
        if B8 > SUBLANE and B8 // TB < 2:
            TB = max(SUBLANE, _pad_to((B8 + 1) // 2, SUBLANE))
    else:
        TB = batch_tile
    assert TB % SUBLANE == 0
    B_p = _pad_to(B, TB)
    grid = (B_p // TB,)

    x_p = x.astype(f32)
    if (B_p, d_in_p) != (B, d_in):
        x_p = jnp.pad(x_p, ((0, B_p - B), (0, d_in_p - d_in)))

    ws_p, bs_p = arrays["ws"], arrays["bs"]
    s_p, t_p, wc_p, bc_p = arrays["s"], arrays["t"], arrays["wc"], arrays["bc"]

    args = [x_p]
    for i in range(n_lin):
        args += [ws_p[i], bs_p[i]]
    args += [s_p, t_p, wc_p, bc_p]

    out_shapes = (
        jax.ShapeDtypeStruct((B_p, d_out_p), f32),   # final Linear output
        jax.ShapeDtypeStruct((B_p, n_add_p), f32),   # ll_pred output
        jax.ShapeDtypeStruct((B_p, d_fp_p), f32),    # fingerprint
    )

    def act_spec(d):
        return pl.BlockSpec((TB, d), lambda i: (i, 0))

    out_specs = (act_spec(d_out_p), act_spec(n_add_p), act_spec(d_fp_p))

    # ---- cost estimate + VMEM budget from actual buffer usage ----
    resident_arrays = list(ws_p) + list(bs_p) + [s_p, t_p, wc_p, bc_p]
    resident_bytes = sum(int(a.size) * a.dtype.itemsize for a in resident_arrays)
    act_in_bytes = TB * d_in_p * 4
    act_out_bytes = TB * (d_out_p + n_add_p + d_fp_p) * 4

    flops = 2 * B_p * (sum(int(w.shape[0] * w.shape[1]) for w in ws_p)
                       + int(wc_p.shape[0] * wc_p.shape[1]))
    transcendentals = B_p * d_fp_p
    bytes_accessed = (int(x_p.size) * 4 + resident_bytes
                      + B_p * (d_out_p + n_add_p + d_fp_p) * 4)

    kernel = _build_kernel(n_lin, mid, compute_dtype)

    def _call(use_buffered):
        def resident_spec(shape):
            # Constant index map -> stays resident across grid steps.
            if use_buffered:
                return pl.BlockSpec(shape, lambda i: (0, 0),
                                    pipeline_mode=pl.Buffered(1))
            return pl.BlockSpec(shape, lambda i: (0, 0))

        in_specs = [act_spec(d_in_p)]
        for i in range(n_lin):
            in_specs += [resident_spec(ws_p[i].shape),
                         resident_spec(bs_p[i].shape)]
        in_specs += [resident_spec(s_p.shape), resident_spec(t_p.shape),
                     resident_spec(wc_p.shape), resident_spec(bc_p.shape)]

        n_wbuf = 1 if use_buffered else 2
        need = (n_wbuf * resident_bytes + 2 * act_in_bytes
                + 2 * act_out_bytes + (4 << 20))
        vmem_limit = int(min(max(need, 16 << 20), 96 << 20))

        return pl.pallas_call(
            kernel,
            out_shape=out_shapes,
            grid_spec=pltpu.PrefetchScalarGridSpec(
                num_scalar_prefetch=0,
                grid=grid,
                in_specs=in_specs,
                out_specs=out_specs,
            ),
            compiler_params=pltpu.CompilerParams(
                dimension_semantics=("parallel",),
                vmem_limit_bytes=vmem_limit,
            ),
            cost_estimate=pl.CostEstimate(
                flops=int(flops),
                transcendentals=int(transcendentals),
                bytes_accessed=int(bytes_accessed),
            ),
        )(*args)

    if single_buffer_weights:
        try:
            x_out_p, np_out_p, fp_p = _call(True)
        except Exception:
            # Older JAX without pipeline_mode/Buffered support: fall back to
            # default double-buffered resident blocks.
            x_out_p, np_out_p, fp_p = _call(False)
    else:
        x_out_p, np_out_p, fp_p = _call(False)

    return (x_out_p[:B, :d_out], np_out_p[:B, :n_add], fp_p[:B, :d_fp])


def init_params(key, layer_list, additional_outputs, bn_eps=1e-5):
    """Deterministic parameters matching FP_AE(layer_list, additional_outputs, dropout)."""
    n_lin = len(layer_list) - 1
    mid = n_lin // 2
    keys = jax.random.split(key, 2 * n_lin)
    params = {}
    k_idx = 0
    for i in range(n_lin):
        d_i, d_o = layer_list[i], layer_list[i + 1]
        bound = 1.0 / math.sqrt(d_i)
        kw, kb = jax.random.split(keys[k_idx]); k_idx += 1
        params[f"w{i}"] = jax.random.uniform(kw, (d_i, d_o), jnp.float32, -bound, bound)
        params[f"b{i}"] = jax.random.uniform(kb, (d_o,), jnp.float32, -bound, bound)
    for i in range(n_lin - 1):
        d = layer_list[i + 1]
        kg, kb2, km, kv = jax.random.split(keys[k_idx], 4); k_idx += 1
        gamma = 1.0 + 0.1 * jax.random.normal(kg, (d,), jnp.float32)
        beta = 0.1 * jax.random.normal(kb2, (d,), jnp.float32)
        r_mean = 0.1 * jax.random.normal(km, (d,), jnp.float32)
        r_var = jnp.abs(1.0 + 0.1 * jax.random.normal(kv, (d,), jnp.float32))
        scale = gamma / jnp.sqrt(r_var + bn_eps)
        params[f"s{i}"] = scale
        params[f"t{i}"] = beta - r_mean * scale
    d_fp = layer_list[mid]
    bound = 1.0 / math.sqrt(d_fp)
    kw, kb = jax.random.split(keys[k_idx])
    params["wc"] = jax.random.uniform(kw, (d_fp, additional_outputs), jnp.float32, -bound, bound)
    params["bc"] = jax.random.uniform(kb, (additional_outputs,), jnp.float32, -bound, bound)
    return params


def reference_forward(x, params, layer_list):
    """Pure-JAX eval-mode FP_AE forward (unfolded, unpadded, f32)."""
    n_lin = len(layer_list) - 1
    mid = n_lin // 2
    h = x
    fp = None
    for i in range(n_lin):
        h = h @ params[f"w{i}"] + params[f"b{i}"]
        if i == n_lin - 1:
            break
        h = jnp.tanh(h) if i == mid - 1 else jnp.maximum(h, 0.0)
        h = h * params[f"s{i}"] + params[f"t{i}"]
        if i == mid - 1:
            fp = h
    np_out = fp @ params["wc"] + params["bc"]
    return h, np_out, fp


if __name__ == "__main__":
    key = jax.random.PRNGKey(0)
    k_x, k_p = jax.random.split(key)

    # Symmetric autoencoder: [in, enc, bottleneck(fingerprint), dec, out]
    layer_list = [64, 48, 32, 48, 64]
    additional_outputs = 8
    batch = 16

    params = init_params(k_p, layer_list, additional_outputs)
    x = jax.random.normal(k_x, (batch, layer_list[0]), jnp.float32)

    r_x, r_np, r_fp = reference_forward(x, params, layer_list)

    # 1) Full-f32 MXU path: tight numerical check against the f32 reference.
    prep_f32 = prepare_params(params, layer_list, additional_outputs, use_bf16=False)
    x_out, np_out, fingerprint = fp_ae_forward(x, prep_f32)
    jax.block_until_ready((x_out, np_out, fingerprint))
    for got, ref in ((x_out, r_x), (np_out, r_np), (fingerprint, r_fp)):
        assert jnp.allclose(got, ref, atol=1e-4, rtol=1e-4), \
            float(jnp.max(jnp.abs(got - ref)))

    # 2) bf16-MXU path (performance config): looser numerical check.
    prep_bf16 = prepare_params(params, layer_list, additional_outputs, use_bf16=True)
    x_out, np_out, fingerprint = fp_ae_forward(x, prep_bf16)
    jax.block_until_ready((x_out, np_out, fingerprint))
    for got, ref in ((x_out, r_x), (np_out, r_np), (fingerprint, r_fp)):
        assert jnp.allclose(got, ref, atol=1e-1, rtol=1e-1), \
            float(jnp.max(jnp.abs(got - ref)))

    print("KERNEL_OK")
</pallas_src>

<mosaic_0001>
module attributes {stable_mosaic.version = 11 : i64} {
  func.func @kernel(%arg0: i32, %arg1: memref<8x128xf32, #tpu.memory_space<vmem>>, %arg2: memref<128x128xf32, #tpu.memory_space<vmem>>, %arg3: memref<1x128xf32, #tpu.memory_space<vmem>>, %arg4: memref<128x128xf32, #tpu.memory_space<vmem>>, %arg5: memref<1x128xf32, #tpu.memory_space<vmem>>, %arg6: memref<128x128xf32, #tpu.memory_space<vmem>>, %arg7: memref<1x128xf32, #tpu.memory_space<vmem>>, %arg8: memref<128x128xf32, #tpu.memory_space<vmem>>, %arg9: memref<1x128xf32, #tpu.memory_space<vmem>>, %arg10: memref<1x128xf32, #tpu.memory_space<vmem>>, %arg11: memref<1x128xf32, #tpu.memory_space<vmem>>, %arg12: memref<128x128xf32, #tpu.memory_space<vmem>>, %arg13: memref<1x128xf32, #tpu.memory_space<vmem>>, %arg14: memref<8x128xf32, #tpu.memory_space<vmem>>, %arg15: memref<8x128xf32, #tpu.memory_space<vmem>>, %arg16: memref<8x128xf32, #tpu.memory_space<vmem>>) attributes {dimension_semantics = [#tpu.dimension_semantics<parallel>], iteration_bounds = array<i64: 2>, scalar_prefetch = 0 : i64, scratch_operands = 0 : i64, tpu.core_type = #tpu.core_type<tc>, window_params = [{transform_indices = @transform_0, window_bounds = array<i64: 8, 128>}, {pipeline_mode = #tpu.pipeline_mode<synchronous>, transform_indices = @transform_1, window_bounds = array<i64: 128, 128>}, {pipeline_mode = #tpu.pipeline_mode<synchronous>, transform_indices = @transform_2, window_bounds = array<i64: 1, 128>}, {pipeline_mode = #tpu.pipeline_mode<synchronous>, transform_indices = @transform_3, window_bounds = array<i64: 128, 128>}, {pipeline_mode = #tpu.pipeline_mode<synchronous>, transform_indices = @transform_4, window_bounds = array<i64: 1, 128>}, {pipeline_mode = #tpu.pipeline_mode<synchronous>, transform_indices = @transform_5, window_bounds = array<i64: 128, 128>}, {pipeline_mode = #tpu.pipeline_mode<synchronous>, transform_indices = @transform_6, window_bounds = array<i64: 1, 128>}, {pipeline_mode = #tpu.pipeline_mode<synchronous>, transform_indices = @transform_7, window_bounds = array<i64: 128, 128>}, {pipeline_mode = #tpu.pipeline_mode<synchronous>, transform_indices = @transform_8, window_bounds = array<i64: 1, 128>}, {pipeline_mode = #tpu.pipeline_mode<synchronous>, transform_indices = @transform_9, window_bounds = array<i64: 1, 128>}, {pipeline_mode = #tpu.pipeline_mode<synchronous>, transform_indices = @transform_10, window_bounds = array<i64: 1, 128>}, {pipeline_mode = #tpu.pipeline_mode<synchronous>, transform_indices = @transform_11, window_bounds = array<i64: 128, 128>}, {pipeline_mode = #tpu.pipeline_mode<synchronous>, transform_indices = @transform_12, window_bounds = array<i64: 1, 128>}, {transform_indices = @transform_13, window_bounds = array<i64: 8, 128>}, {transform_indices = @transform_14, window_bounds = array<i64: 8, 128>}, {transform_indices = @transform_15, window_bounds = array<i64: 8, 128>}]} {
    %c0 = arith.constant 0 : index
    %c0_0 = arith.constant 0 : index
    %0 = vector.load %arg1[%c0, %c0_0] : memref<8x128xf32, #tpu.memory_space<vmem>>, vector<8x128xf32>
    %c0_1 = arith.constant 0 : index
    %c0_2 = arith.constant 0 : index
    %1 = vector.load %arg2[%c0_1, %c0_2] : memref<128x128xf32, #tpu.memory_space<vmem>>, vector<128x128xf32>
    %c0_3 = arith.constant 0 : index
    %c0_4 = arith.constant 0 : index
    %2 = vector.load %arg3[%c0_3, %c0_4] : memref<1x128xf32, #tpu.memory_space<vmem>>, vector<1x128xf32>
    %cst = arith.constant dense<0.000000e+00> : vector<8x128xf32>
    %3 = tpu.matmul %0, %1, %cst {dimension_numbers = #tpu.dot_dimension_numbers<[1], [0], [0], [1], [0, 0, 1, 1], [], []>} : vector<8x128xf32>, vector<128x128xf32>, vector<8x128xf32> -> vector<8x128xf32>
    %4 = vector.broadcast %2 : vector<1x128xf32> to vector<8x128xf32>
    %5 = arith.addf %3, %4 : vector<8x128xf32>
    %cst_5 = arith.constant 0.000000e+00 : f32
    %6 = vector.broadcast %cst_5 : f32 to vector<8x128xf32>
    %7 = arith.maximumf %5, %6 : vector<8x128xf32>
    %c0_6 = arith.constant 0 : index
    %c0_7 = arith.constant 0 : index
    %8 = vector.load %arg4[%c0_6, %c0_7] : memref<128x128xf32, #tpu.memory_space<vmem>>, vector<128x128xf32>
    %c0_8 = arith.constant 0 : index
    %c0_9 = arith.constant 0 : index
    %9 = vector.load %arg5[%c0_8, %c0_9] : memref<1x128xf32, #tpu.memory_space<vmem>>, vector<1x128xf32>
    %cst_10 = arith.constant dense<0.000000e+00> : vector<8x128xf32>
    %10 = tpu.matmul %7, %8, %cst_10 {dimension_numbers = #tpu.dot_dimension_numbers<[1], [0], [0], [1], [0, 0, 1, 1], [], []>} : vector<8x128xf32>, vector<128x128xf32>, vector<8x128xf32> -> vector<8x128xf32>
    %11 = vector.broadcast %9 : vector<1x128xf32> to vector<8x128xf32>
    %12 = arith.addf %10, %11 : vector<8x128xf32>
    %13 = math.tanh %12 : vector<8x128xf32>
    %c0_11 = arith.constant 0 : index
    %c0_12 = arith.constant 0 : index
    %14 = vector.load %arg10[%c0_11, %c0_12] : memref<1x128xf32, #tpu.memory_space<vmem>>, vector<1x128xf32>
    %15 = vector.broadcast %14 : vector<1x128xf32> to vector<8x128xf32>
    %16 = arith.mulf %13, %15 : vector<8x128xf32>
    %c0_13 = arith.constant 0 : index
    %c0_14 = arith.constant 0 : index
    %17 = vector.load %arg11[%c0_13, %c0_14] : memref<1x128xf32, #tpu.memory_space<vmem>>, vector<1x128xf32>
    %18 = vector.broadcast %17 : vector<1x128xf32> to vector<8x128xf32>
    %19 = arith.addf %16, %18 : vector<8x128xf32>
    %c0_15 = arith.constant 0 : index
    %c0_16 = arith.constant 0 : index
    %20 = vector.load %arg16[%c0_15, %c0_16] : memref<8x128xf32, #tpu.memory_space<vmem>>, vector<8x128xf32>
    tpu.vector_store %arg16[%c0_15, %c0_16], %19 {strides = array<i32>} : memref<8x128xf32, #tpu.memory_space<vmem>>, vector<8x128xf32>,
    %c0_17 = arith.constant 0 : index
    %c0_18 = arith.constant 0 : index
    %21 = vector.load %arg12[%c0_17, %c0_18] : memref<128x128xf32, #tpu.memory_space<vmem>>, vector<128x128xf32>
    %cst_19 = arith.constant dense<0.000000e+00> : vector<8x128xf32>
    %22 = tpu.matmul %19, %21, %cst_19 {dimension_numbers = #tpu.dot_dimension_numbers<[1], [0], [0], [1], [0, 0, 1, 1], [], []>} : vector<8x128xf32>, vector<128x128xf32>, vector<8x128xf32> -> vector<8x128xf32>
    %c0_20 = arith.constant 0 : index
    %c0_21 = arith.constant 0 : index
    %23 = vector.load %arg13[%c0_20, %c0_21] : memref<1x128xf32, #tpu.memory_space<vmem>>, vector<1x128xf32>
    %24 = vector.broadcast %23 : vector<1x128xf32> to vector<8x128xf32>
    %25 = arith.addf %22, %24 : vector<8x128xf32>
    %c0_22 = arith.constant 0 : index
    %c0_23 = arith.constant 0 : index
    %26 = vector.load %arg15[%c0_22, %c0_23] : memref<8x128xf32, #tpu.memory_space<vmem>>, vector<8x128xf32>
    tpu.vector_store %arg15[%c0_22, %c0_23], %25 {strides = array<i32>} : memref<8x128xf32, #tpu.memory_space<vmem>>, vector<8x128xf32>,
    %c0_24 = arith.constant 0 : index
    %c0_25 = arith.constant 0 : index
    %27 = vector.load %arg6[%c0_24, %c0_25] : memref<128x128xf32, #tpu.memory_space<vmem>>, vector<128x128xf32>
    %c0_26 = arith.constant 0 : index
    %c0_27 = arith.constant 0 : index
    %28 = vector.load %arg7[%c0_26, %c0_27] : memref<1x128xf32, #tpu.memory_space<vmem>>, vector<1x128xf32>
    %cst_28 = arith.constant dense<0.000000e+00> : vector<8x128xf32>
    %29 = tpu.matmul %19, %27, %cst_28 {dimension_numbers = #tpu.dot_dimension_numbers<[1], [0], [0], [1], [0, 0, 1, 1], [], []>} : vector<8x128xf32>, vector<128x128xf32>, vector<8x128xf32> -> vector<8x128xf32>
    %30 = vector.broadcast %28 : vector<1x128xf32> to vector<8x128xf32>
    %31 = arith.addf %29, %30 : vector<8x128xf32>
    %cst_29 = arith.constant 0.000000e+00 : f32
    %32 = vector.broadcast %cst_29 : f32 to vector<8x128xf32>
    %33 = arith.maximumf %31, %32 : vector<8x128xf32>
    %c0_30 = arith.constant 0 : index
    %c0_31 = arith.constant 0 : index
    %34 = vector.load %arg8[%c0_30, %c0_31] : memref<128x128xf32, #tpu.memory_space<vmem>>, vector<128x128xf32>
    %c0_32 = arith.constant 0 : index
    %c0_33 = arith.constant 0 : index
    %35 = vector.load %arg9[%c0_32, %c0_33] : memref<1x128xf32, #tpu.memory_space<vmem>>, vector<1x128xf32>
    %cst_34 = arith.constant dense<0.000000e+00> : vector<8x128xf32>
    %36 = tpu.matmul %33, %34, %cst_34 {dimension_numbers = #tpu.dot_dimension_numbers<[1], [0], [0], [1], [0, 0, 1, 1], [], []>} : vector<8x128xf32>, vector<128x128xf32>, vector<8x128xf32> -> vector<8x128xf32>
    %37 = vector.broadcast %35 : vector<1x128xf32> to vector<8x128xf32>
    %38 = arith.addf %36, %37 : vector<8x128xf32>
    %c0_35 = arith.constant 0 : index
    %c0_36 = arith.constant 0 : index
    %39 = vector.load %arg14[%c0_35, %c0_36] : memref<8x128xf32, #tpu.memory_space<vmem>>, vector<8x128xf32>
    tpu.vector_store %arg14[%c0_35, %c0_36], %38 {strides = array<i32>} : memref<8x128xf32, #tpu.memory_space<vmem>>, vector<8x128xf32>,
    return
  }
  func.func @transform_0(%arg0: i32) -> (i32, i32) {
    %c0_i32 = arith.constant 0 : i32
    %c0_i32_0 = arith.constant 0 : i32
    return %arg0, %c0_i32 : i32, i32
  }
  func.func @transform_1(%arg0: i32) -> (i32, i32) {
    %c0_i32 = arith.constant 0 : i32
    %c0_i32_0 = arith.constant 0 : i32
    %c0_i32_1 = arith.constant 0 : i32
    return %c0_i32, %c0_i32_0 : i32, i32
  }
  func.func @transform_2(%arg0: i32) -> (i32, i32) {
    %c0_i32 = arith.constant 0 : i32
    %c0_i32_0 = arith.constant 0 : i32
    %c0_i32_1 = arith.constant 0 : i32
    return %c0_i32, %c0_i32_0 : i32, i32
  }
  func.func @transform_3(%arg0: i32) -> (i32, i32) {
    %c0_i32 = arith.constant 0 : i32
    %c0_i32_0 = arith.constant 0 : i32
    %c0_i32_1 = arith.constant 0 : i32
    return %c0_i32, %c0_i32_0 : i32, i32
  }
  func.func @transform_4(%arg0: i32) -> (i32, i32) {
    %c0_i32 = arith.constant 0 : i32
    %c0_i32_0 = arith.constant 0 : i32
    %c0_i32_1 = arith.constant 0 : i32
    return %c0_i32, %c0_i32_0 : i32, i32
  }
  func.func @transform_5(%arg0: i32) -> (i32, i32) {
    %c0_i32 = arith.constant 0 : i32
    %c0_i32_0 = arith.constant 0 : i32
    %c0_i32_1 = arith.constant 0 : i32
    return %c0_i32, %c0_i32_0 : i32, i32
  }
  func.func @transform_6(%arg0: i32) -> (i32, i32) {
    %c0_i32 = arith.constant 0 : i32
    %c0_i32_0 = arith.constant 0 : i32
    %c0_i32_1 = arith.constant 0 : i32
    return %c0_i32, %c0_i32_0 : i32, i32
  }
  func.func @transform_7(%arg0: i32) -> (i32, i32) {
    %c0_i32 = arith.constant 0 : i32
    %c0_i32_0 = arith.constant 0 : i32
    %c0_i32_1 = arith.constant 0 : i32
    return %c0_i32, %c0_i32_0 : i32, i32
  }
  func.func @transform_8(%arg0: i32) -> (i32, i32) {
    %c0_i32 = arith.constant 0 : i32
    %c0_i32_0 = arith.constant 0 : i32
    %c0_i32_1 = arith.constant 0 : i32
    return %c0_i32, %c0_i32_0 : i32, i32
  }
  func.func @transform_9(%arg0: i32) -> (i32, i32) {
    %c0_i32 = arith.constant 0 : i32
    %c0_i32_0 = arith.constant 0 : i32
    %c0_i32_1 = arith.constant 0 : i32
    return %c0_i32, %c0_i32_0 : i32, i32
  }
  func.func @transform_10(%arg0: i32) -> (i32, i32) {
    %c0_i32 = arith.constant 0 : i32
    %c0_i32_0 = arith.constant 0 : i32
    %c0_i32_1 = arith.constant 0 : i32
    return %c0_i32, %c0_i32_0 : i32, i32
  }
  func.func @transform_11(%arg0: i32) -> (i32, i32) {
    %c0_i32 = arith.constant 0 : i32
    %c0_i32_0 = arith.constant 0 : i32
    %c0_i32_1 = arith.constant 0 : i32
    return %c0_i32, %c0_i32_0 : i32, i32
  }
  func.func @transform_12(%arg0: i32) -> (i32, i32) {
    %c0_i32 = arith.constant 0 : i32
    %c0_i32_0 = arith.constant 0 : i32
    %c0_i32_1 = arith.constant 0 : i32
    return %c0_i32, %c0_i32_0 : i32, i32
  }
  func.func @transform_13(%arg0: i32) -> (i32, i32) {
    %c0_i32 = arith.constant 0 : i32
    %c0_i32_0 = arith.constant 0 : i32
    return %arg0, %c0_i32 : i32, i32
  }
  func.func @transform_14(%arg0: i32) -> (i32, i32) {
    %c0_i32 = arith.constant 0 : i32
    %c0_i32_0 = arith.constant 0 : i32
    return %arg0, %c0_i32 : i32, i32
  }
  func.func @transform_15(%arg0: i32) -> (i32, i32) {
    %c0_i32 = arith.constant 0 : i32
    %c0_i32_0 = arith.constant 0 : i32
    return %arg0, %c0_i32 : i32, i32
  }
}

module attributes {stable_mosaic.version = 11 : i64} {
  func.func @kernel(%arg0: i32, %arg1: memref<8x128xf32, #tpu.memory_space<vmem>>, %arg2: memref<128x128xf32, #tpu.memory_space<vmem>>, %arg3: memref<1x128xf32, #tpu.memory_space<vmem>>, %arg4: memref<128x128xf32, #tpu.memory_space<vmem>>, %arg5: memref<1x128xf32, #tpu.memory_space<vmem>>, %arg6: memref<128x128xf32, #tpu.memory_space<vmem>>, %arg7: memref<1x128xf32, #tpu.memory_space<vmem>>, %arg8: memref<128x128xf32, #tpu.memory_space<vmem>>, %arg9: memref<1x128xf32, #tpu.memory_space<vmem>>, %arg10: memref<1x128xf32, #tpu.memory_space<vmem>>, %arg11: memref<1x128xf32, #tpu.memory_space<vmem>>, %arg12: memref<128x128xf32, #tpu.memory_space<vmem>>, %arg13: memref<1x128xf32, #tpu.memory_space<vmem>>, %arg14: memref<8x128xf32, #tpu.memory_space<vmem>>, %arg15: memref<8x128xf32, #tpu.memory_space<vmem>>, %arg16: memref<8x128xf32, #tpu.memory_space<vmem>>) attributes {dimension_semantics = [#tpu.dimension_semantics<parallel>], iteration_bounds = array<i64: 2>, scalar_prefetch = 0 : i64, scratch_operands = 0 : i64, tpu.core_type = #tpu.core_type<tc>, window_params = [{transform_indices = @transform_0, window_bounds = array<i64: 8, 128>}, {pipeline_mode = #tpu.pipeline_mode<synchronous>, transform_indices = @transform_1, window_bounds = array<i64: 128, 128>}, {pipeline_mode = #tpu.pipeline_mode<synchronous>, transform_indices = @transform_2, window_bounds = array<i64: 1, 128>}, {pipeline_mode = #tpu.pipeline_mode<synchronous>, transform_indices = @transform_3, window_bounds = array<i64: 128, 128>}, {pipeline_mode = #tpu.pipeline_mode<synchronous>, transform_indices = @transform_4, window_bounds = array<i64: 1, 128>}, {pipeline_mode = #tpu.pipeline_mode<synchronous>, transform_indices = @transform_5, window_bounds = array<i64: 128, 128>}, {pipeline_mode = #tpu.pipeline_mode<synchronous>, transform_indices = @transform_6, window_bounds = array<i64: 1, 128>}, {pipeline_mode = #tpu.pipeline_mode<synchronous>, transform_indices = @transform_7, window_bounds = array<i64: 128, 128>}, {pipeline_mode = #tpu.pipeline_mode<synchronous>, transform_indices = @transform_8, window_bounds = array<i64: 1, 128>}, {pipeline_mode = #tpu.pipeline_mode<synchronous>, transform_indices = @transform_9, window_bounds = array<i64: 1, 128>}, {pipeline_mode = #tpu.pipeline_mode<synchronous>, transform_indices = @transform_10, window_bounds = array<i64: 1, 128>}, {pipeline_mode = #tpu.pipeline_mode<synchronous>, transform_indices = @transform_11, window_bounds = array<i64: 128, 128>}, {pipeline_mode = #tpu.pipeline_mode<synchronous>, transform_indices = @transform_12, window_bounds = array<i64: 1, 128>}, {transform_indices = @transform_13, window_bounds = array<i64: 8, 128>}, {transform_indices = @transform_14, window_bounds = array<i64: 8, 128>}, {transform_indices = @transform_15, window_bounds = array<i64: 8, 128>}]} {
    %c0 = arith.constant 0 : index
    %c0_0 = arith.constant 0 : index
    %0 = vector.load %arg1[%c0, %c0_0] : memref<8x128xf32, #tpu.memory_space<vmem>>, vector<8x128xf32>
    %c0_1 = arith.constant 0 : index
    %c0_2 = arith.constant 0 : index
    %1 = vector.load %arg2[%c0_1, %c0_2] : memref<128x128xf32, #tpu.memory_space<vmem>>, vector<128x128xf32>
    %c0_3 = arith.constant 0 : index
    %c0_4 = arith.constant 0 : index
    %2 = vector.load %arg3[%c0_3, %c0_4] : memref<1x128xf32, #tpu.memory_space<vmem>>, vector<1x128xf32>
    %cst = arith.constant dense<0.000000e+00> : vector<8x128xf32>
    %3 = tpu.matmul %0, %1, %cst {dimension_numbers = #tpu.dot_dimension_numbers<[1], [0], [0], [1], [0, 0, 1, 1], [], []>} : vector<8x128xf32>, vector<128x128xf32>, vector<8x128xf32> -> vector<8x128xf32>
    %4 = vector.broadcast %2 : vector<1x128xf32> to vector<8x128xf32>
    %5 = arith.addf %3, %4 : vector<8x128xf32>
    %cst_5 = arith.constant 0.000000e+00 : f32
    %6 = vector.broadcast %cst_5 : f32 to vector<8x128xf32>
    %7 = arith.maximumf %5, %6 : vector<8x128xf32>
    %c0_6 = arith.constant 0 : index
    %c0_7 = arith.constant 0 : index
    %8 = vector.load %arg4[%c0_6, %c0_7] : memref<128x128xf32, #tpu.memory_space<vmem>>, vector<128x128xf32>
    %c0_8 = arith.constant 0 : index
    %c0_9 = arith.constant 0 : index
    %9 = vector.load %arg5[%c0_8, %c0_9] : memref<1x128xf32, #tpu.memory_space<vmem>>, vector<1x128xf32>
    %cst_10 = arith.constant dense<0.000000e+00> : vector<8x128xf32>
    %10 = tpu.matmul %7, %8, %cst_10 {dimension_numbers = #tpu.dot_dimension_numbers<[1], [0], [0], [1], [0, 0, 1, 1], [], []>} : vector<8x128xf32>, vector<128x128xf32>, vector<8x128xf32> -> vector<8x128xf32>
    %11 = vector.broadcast %9 : vector<1x128xf32> to vector<8x128xf32>
    %12 = arith.addf %10, %11 : vector<8x128xf32>
    %13 = math.tanh %12 : vector<8x128xf32>
    %c0_11 = arith.constant 0 : index
    %c0_12 = arith.constant 0 : index
    %14 = vector.load %arg10[%c0_11, %c0_12] : memref<1x128xf32, #tpu.memory_space<vmem>>, vector<1x128xf32>
    %15 = vector.broadcast %14 : vector<1x128xf32> to vector<8x128xf32>
    %16 = arith.mulf %13, %15 : vector<8x128xf32>
    %c0_13 = arith.constant 0 : index
    %c0_14 = arith.constant 0 : index
    %17 = vector.load %arg11[%c0_13, %c0_14] : memref<1x128xf32, #tpu.memory_space<vmem>>, vector<1x128xf32>
    %18 = vector.broadcast %17 : vector<1x128xf32> to vector<8x128xf32>
    %19 = arith.addf %16, %18 : vector<8x128xf32>
    %c0_15 = arith.constant 0 : index
    %c0_16 = arith.constant 0 : index
    %20 = vector.load %arg16[%c0_15, %c0_16] : memref<8x128xf32, #tpu.memory_space<vmem>>, vector<8x128xf32>
    tpu.vector_store %arg16[%c0_15, %c0_16], %19 {strides = array<i32>} : memref<8x128xf32, #tpu.memory_space<vmem>>, vector<8x128xf32>,
    %c0_17 = arith.constant 0 : index
    %c0_18 = arith.constant 0 : index
    %21 = vector.load %arg12[%c0_17, %c0_18] : memref<128x128xf32, #tpu.memory_space<vmem>>, vector<128x128xf32>
    %cst_19 = arith.constant dense<0.000000e+00> : vector<8x128xf32>
    %22 = tpu.matmul %19, %21, %cst_19 {dimension_numbers = #tpu.dot_dimension_numbers<[1], [0], [0], [1], [0, 0, 1, 1], [], []>} : vector<8x128xf32>, vector<128x128xf32>, vector<8x128xf32> -> vector<8x128xf32>
    %c0_20 = arith.constant 0 : index
    %c0_21 = arith.constant 0 : index
    %23 = vector.load %arg13[%c0_20, %c0_21] : memref<1x128xf32, #tpu.memory_space<vmem>>, vector<1x128xf32>
    %24 = vector.broadcast %23 : vector<1x128xf32> to vector<8x128xf32>
    %25 = arith.addf %22, %24 : vector<8x128xf32>
    %c0_22 = arith.constant 0 : index
    %c0_23 = arith.constant 0 : index
    %26 = vector.load %arg15[%c0_22, %c0_23] : memref<8x128xf32, #tpu.memory_space<vmem>>, vector<8x128xf32>
    tpu.vector_store %arg15[%c0_22, %c0_23], %25 {strides = array<i32>} : memref<8x128xf32, #tpu.memory_space<vmem>>, vector<8x128xf32>,
    %c0_24 = arith.constant 0 : index
    %c0_25 = arith.constant 0 : index
    %27 = vector.load %arg6[%c0_24, %c0_25] : memref<128x128xf32, #tpu.memory_space<vmem>>, vector<128x128xf32>
    %c0_26 = arith.constant 0 : index
    %c0_27 = arith.constant 0 : index
    %28 = vector.load %arg7[%c0_26, %c0_27] : memref<1x128xf32, #tpu.memory_space<vmem>>, vector<1x128xf32>
    %cst_28 = arith.constant dense<0.000000e+00> : vector<8x128xf32>
    %29 = tpu.matmul %19, %27, %cst_28 {dimension_numbers = #tpu.dot_dimension_numbers<[1], [0], [0], [1], [0, 0, 1, 1], [], []>} : vector<8x128xf32>, vector<128x128xf32>, vector<8x128xf32> -> vector<8x128xf32>
    %30 = vector.broadcast %28 : vector<1x128xf32> to vector<8x128xf32>
    %31 = arith.addf %29, %30 : vector<8x128xf32>
    %cst_29 = arith.constant 0.000000e+00 : f32
    %32 = vector.broadcast %cst_29 : f32 to vector<8x128xf32>
    %33 = arith.maximumf %31, %32 : vector<8x128xf32>
    %c0_30 = arith.constant 0 : index
    %c0_31 = arith.constant 0 : index
    %34 = vector.load %arg8[%c0_30, %c0_31] : memref<128x128xf32, #tpu.memory_space<vmem>>, vector<128x128xf32>
    %c0_32 = arith.constant 0 : index
    %c0_33 = arith.constant 0 : index
    %35 = vector.load %arg9[%c0_32, %c0_33] : memref<1x128xf32, #tpu.memory_space<vmem>>, vector<1x128xf32>
    %cst_34 = arith.constant dense<0.000000e+00> : vector<8x128xf32>
    %36 = tpu.matmul %33, %34, %cst_34 {dimension_numbers = #tpu.dot_dimension_numbers<[1], [0], [0], [1], [0, 0, 1, 1], [], []>} : vector<8x128xf32>, vector<128x128xf32>, vector<8x128xf32> -> vector<8x128xf32>
    %37 = vector.broadcast %35 : vector<1x128xf32> to vector<8x128xf32>
    %38 = arith.addf %36, %37 : vector<8x128xf32>
    %c0_35 = arith.constant 0 : index
    %c0_36 = arith.constant 0 : index
    %39 = vector.load %arg14[%c0_35, %c0_36] : memref<8x128xf32, #tpu.memory_space<vmem>>, vector<8x128xf32>
    tpu.vector_store %arg14[%c0_35, %c0_36], %38 {strides = array<i32>} : memref<8x128xf32, #tpu.memory_space<vmem>>, vector<8x128xf32>,
    return
  }
  func.func @transform_0(%arg0: i32) -> (i32, i32) {
    %c0_i32 = arith.constant 0 : i32
    %c0_i32_0 = arith.constant 0 : i32
    return %arg0, %c0_i32 : i32, i32
  }
  func.func @transform_1(%arg0: i32) -> (i32, i32) {
    %c0_i32 = arith.constant 0 : i32
    %c0_i32_0 = arith.constant 0 : i32
    %c0_i32_1 = arith.constant 0 : i32
    return %c0_i32, %c0_i32_0 : i32, i32
  }
  func.func @transform_2(%arg0: i32) -> (i32, i32) {
    %c0_i32 = arith.constant 0 : i32
    %c0_i32_0 = arith.constant 0 : i32
    %c0_i32_1 = arith.constant 0 : i32
    return %c0_i32, %c0_i32_0 : i32, i32
  }
  func.func @transform_3(%arg0: i32) -> (i32, i32) {
    %c0_i32 = arith.constant 0 : i32
    %c0_i32_0 = arith.constant 0 : i32
    %c0_i32_1 = arith.constant 0 : i32
    return %c0_i32, %c0_i32_0 : i32, i32
  }
  func.func @transform_4(%arg0: i32) -> (i32, i32) {
    %c0_i32 = arith.constant 0 : i32
    %c0_i32_0 = arith.constant 0 : i32
    %c0_i32_1 = arith.constant 0 : i32
    return %c0_i32, %c0_i32_0 : i32, i32
  }
  func.func @transform_5(%arg0: i32) -> (i32, i32) {
    %c0_i32 = arith.constant 0 : i32
    %c0_i32_0 = arith.constant 0 : i32
    %c0_i32_1 = arith.constant 0 : i32
    return %c0_i32, %c0_i32_0 : i32, i32
  }
  func.func @transform_6(%arg0: i32) -> (i32, i32) {
    %c0_i32 = arith.constant 0 : i32
    %c0_i32_0 = arith.constant 0 : i32
    %c0_i32_1 = arith.constant 0 : i32
    return %c0_i32, %c0_i32_0 : i32, i32
  }
  func.func @transform_7(%arg0: i32) -> (i32, i32) {
    %c0_i32 = arith.constant 0 : i32
    %c0_i32_0 = arith.constant 0 : i32
    %c0_i32_1 = arith.constant 0 : i32
    return %c0_i32, %c0_i32_0 : i32, i32
  }
  func.func @transform_8(%arg0: i32) -> (i32, i32) {
    %c0_i32 = arith.constant 0 : i32
    %c0_i32_0 = arith.constant 0 : i32
    %c0_i32_1 = arith.constant 0 : i32
    return %c0_i32, %c0_i32_0 : i32, i32
  }
  func.func @transform_9(%arg0: i32) -> (i32, i32) {
    %c0_i32 = arith.constant 0 : i32
    %c0_i32_0 = arith.constant 0 : i32
    %c0_i32_1 = arith.constant 0 : i32
    return %c0_i32, %c0_i32_0 : i32, i32
  }
  func.func @transform_10(%arg0: i32) -> (i32, i32) {
    %c0_i32 = arith.constant 0 : i32
    %c0_i32_0 = arith.constant 0 : i32
    %c0_i32_1 = arith.constant 0 : i32
    return %c0_i32, %c0_i32_0 : i32, i32
  }
  func.func @transform_11(%arg0: i32) -> (i32, i32) {
    %c0_i32 = arith.constant 0 : i32
    %c0_i32_0 = arith.constant 0 : i32
    %c0_i32_1 = arith.constant 0 : i32
    return %c0_i32, %c0_i32_0 : i32, i32
  }
  func.func @transform_12(%arg0: i32) -> (i32, i32) {
    %c0_i32 = arith.constant 0 : i32
    %c0_i32_0 = arith.constant 0 : i32
    %c0_i32_1 = arith.constant 0 : i32
    return %c0_i32, %c0_i32_0 : i32, i32
  }
  func.func @transform_13(%arg0: i32) -> (i32, i32) {
    %c0_i32 = arith.constant 0 : i32
    %c0_i32_0 = arith.constant 0 : i32
    return %arg0, %c0_i32 : i32, i32
  }
  func.func @transform_14(%arg0: i32) -> (i32, i32) {
    %c0_i32 = arith.constant 0 : i32
    %c0_i32_0 = arith.constant 0 : i32
    return %arg0, %c0_i32 : i32, i32
  }
  func.func @transform_15(%arg0: i32) -> (i32, i32) {
    %c0_i32 = arith.constant 0 : i32
    %c0_i32_0 = arith.constant 0 : i32
    return %arg0, %c0_i32 : i32, i32
  }
}

</mosaic_0001>

<bundles_post_ra>
// kernel: tpu_custom_call.1
= control target key start
LH: loop header
LB: loop body
LE: loop exit
PB: predicated region body
PF: predicated region fallthrough
CT: control target
= control target key end

     0   :  { %s1861_s0 = inlined_call_operand.hbm [shape: f32[16,128], index: 0, kind: input, shape index: {}]   ;;  %s1862_s1 = inlined_call_operand.hbm [shape: f32[128,128], index: 1, kind: input, shape index: {}]   ;;  %s1863_s2 = inlined_call_operand.vmem [shape: f32[1,128], index: 2, kind: input, shape index: {}]   ;;  %s1864_s3 = inlined_call_operand.hbm [shape: f32[128,128], index: 3, kind: input, shape index: {}]   ;;  %s1865_s4 = inlined_call_operand.vmem [shape: f32[1,128], index: 4, kind: input, shape index: {}]   ;;  %s1866_s5 = inlined_call_operand.hbm [shape: f32[128,128], index: 5, kind: input, shape index: {}]   ;;  %s1867_s6 = inlined_call_operand.vmem [shape: f32[1,128], index: 6, kind: input, shape index: {}]   ;;  %s1868_s7 = inlined_call_operand.hbm [shape: f32[128,128], index: 7, kind: input, shape index: {}]   ;;  %s1869_s8 = inlined_call_operand.vmem [shape: f32[1,128], index: 8, kind: input, shape index: {}]   ;;  %s1870_s9 = inlined_call_operand.vmem [shape: f32[1,128], index: 9, kind: input, shape index: {}]   ;;  %s1871_s10 = inlined_call_operand.vmem [shape: f32[1,128], index: 10, kind: input, shape index: {}]   ;;  %s1872_s11 = inlined_call_operand.hbm [shape: f32[128,128], index: 11, kind: input, shape index: {}]   ;;  %s1873_s12 = inlined_call_operand.vmem [shape: f32[1,128], index: 12, kind: input, shape index: {}]   ;;  %s1874_s13 = inlined_call_operand.hbm [shape: f32[16,128], index: 13, kind: output, shape index: {0}]   ;;  %s1875_s14 = inlined_call_operand.hbm [shape: f32[16,128], index: 14, kind: output, shape index: {1}]   ;;  %s1876_s15 = inlined_call_operand.hbm [shape: f32[16,128], index: 15, kind: output, shape index: {2}]  }
   0x1   :  { %1882 = sst [smem:[#allocation23_spill]] %s1861_s0 }
   0x2   :  { %1883 = sst [smem:[#allocation24_spill]] %s1862_s1 }
   0x3   :  { %1884 = sst [smem:[#allocation25_spill]] %s1863_s2 }
   0x4   :  { %1885 = sst [smem:[#allocation26_spill]] %s1864_s3 }
   0x5   :  { %1886 = sst [smem:[#allocation27_spill]] %s1865_s4 }
   0x6   :  { %1887 = sst [smem:[#allocation28_spill]] %s1866_s5 }
   0x7   :  { %1888 = sst [smem:[#allocation29_spill]] %s1867_s6 }
   0x8   :  { %1889 = sst [smem:[#allocation30_spill]] %s1868_s7 }
   0x9   :  { %1890 = sst [smem:[#allocation31_spill]] %s1869_s8 }
   0xa   :  { %1891 = sst [smem:[#allocation32_spill]] %s1872_s11 }
   0xb   :  { %1892 = sst [smem:[#allocation33_spill]] %s1874_s13 }
   0xc   :  { %1893 = sst [smem:[#allocation34_spill]] %s1875_s14 }
   0xd   :  { %1894 = sst [smem:[#allocation35_spill]] %s1876_s15 }
   0xe   :  { %21 = vsyncpa [#allocation3], 0 }
   0xf   :  { %23 = vsyncpa [#allocation3 + $0x1], 0 }
  0x10   :  { %24 = vsyncpa [#allocation6], 0 }
  0x11   :  { %25 = vsyncpa [#allocation9], 0 }
  0x12   :  { %26 = vsyncpa [#allocation12], 0 }
  0x13   :  { %27 = vsyncpa [#allocation4], 0 }
  0x14   :  { %29 = vsyncpa [#allocation4 + $0x1], 0 }
  0x15   :  { %30 = vsyncpa [#allocation15], 0 }
  0x16   :  { %32 = vsyncpa [#allocation15 + $0x1], 0  ;;  %s1618_s18 = smov 0   ;;  %s1620_s19 = smov 0  }
  0x17   :  { %s1622_s20 = smov 0   ;;  %s1624_s21 = smov 0  }
  0x18 LB: > { %s1895_s1 = sld [smem:[#allocation24_spill]]  ;;  %s1642_s25 = sadd.s32 4294967295, %s1529_s21   ;;  %s1529_s21 = sphi %s1624_s21, %s1920_s21   ;;  %s1525_s20 = sphi %s1622_s20, %s1919_s20   ;;  %s1521_s19 = sphi %s1620_s19, %s1918_s19   ;;  %s1517_s18 = sphi %s1618_s18, %s1917_s18  }
  0x19   : > { %p1066_p0 = scmp.ge.s32.totalorder %s1529_s21, 1  ;;  %p59_p1 = scmp.eq.s32.totalorder %s1642_s25, 0 }
  0x1a   : > { %p399_p2 = scmp.lt.s32.totalorder %s1529_s21, 3  ;;  %s1531_s27 = smov [#allocation5]  }
  0x1b   : > { %s412_s28 = sshll.u32 %s1531_s27, 4  ;;  %s1897_s5 = sld [smem:[#allocation28_spill]]  ;;  %s413_s28 = int_to_ptr.vmem [resolvable:$true] %s412_s28 }
  0x1c   : > { %p1647_p3 = pnand %p1066_p0, %p399_p2  ;;  %s1899_s3 = sld [smem:[#allocation26_spill]] }
  0x1d   : > { %s1533_s13 = smov 128   ;;  %s1534_s15 = smov 8  }
  0x1e   : > { %s410_s24 = sshll.u32 %s1895_s1, 4  ;;  %p1121_p4 = pneg %p1647_p3  ;;  %s411_s24 = int_to_ptr.hbm [resolvable:$true] %s410_s24 }
  0x1f   : > { %s1532_s1 = smov [#allocation8]   ;;  %s1900_s7 = sld [smem:[#allocation30_spill]] }
  0x20   : > { %p1659_p6 = pnand %p1121_p4, %p59_p1  ;;  %s446_s8 = sshll.u32 %s1532_s1, 4  ;;  %s447_s8 = int_to_ptr.vmem [resolvable:$true] %s446_s8 }
  0x21   : > { %s444_s16 = sshll.u32 %s1897_s5, 4  ;;  %s1535_s14 = smov [#allocation7]   ;;  %s445_s16 = int_to_ptr.hbm [resolvable:$true] %s444_s16 }
  0x22   : > { %s427_s27 = sshll.u32 %s1899_s3, 4  ;;  %s429_s22 = sshll.u32 %s1535_s14, 4  ;;  %s428_s27 = int_to_ptr.hbm [resolvable:$true] %s427_s27  ;;  %s430_s22 = int_to_ptr.vmem [resolvable:$true] %s429_s22 }
  0x23   : > { %1124 = dma.hbm_to_vmem [thread:$0]  (!%p1659_p6), %s411_s24, 2048, %s413_s28, [#allocation6], %s1533_s13, %s1533_s13, %s1534_s15  }
  0x24   : > { %1130 = dma.hbm_to_vmem [thread:$0]  (!%p1659_p6), %s445_s16, 2048, %s447_s8, [#allocation9], %s1533_s13, %s1533_s13, %s1534_s15  }
  0x25   : > { %s461_s5 = sshll.u32 %s1900_s7, 4  ;;  %s1536_s1 = smov [#allocation10]   ;;  %s462_s5 = int_to_ptr.hbm [resolvable:$true] %s461_s5 }
  0x26   : > { %1127 = dma.hbm_to_vmem [thread:$0]  (!%p1659_p6), %s428_s27, 2048, %s430_s22, [#allocation6], %s1533_s13, %s1533_s13, %s1534_s15  }
  0x27   : > { %s463_s8 = sshll.u32 %s1536_s1, 4  ;;  %s1901_s11 = sld [smem:[#allocation32_spill]]  ;;  %s464_s8 = int_to_ptr.vmem [resolvable:$true] %s463_s8 }
  0x28   : > { %1133 = dma.hbm_to_vmem [thread:$0]  (!%p1659_p6), %s462_s5, 2048, %s464_s8, [#allocation9], %s1533_s13, %s1533_s13, %s1534_s15  }
  0x29   : > { %s1537_s14 = smov [#allocation11]   ;;  %s1880_s27 = sadd.s32 4294967294, %s1529_s21  }
  0x2a   : > { %s486_s23 = sshll.u32 %s1537_s14, 4  ;;  %s1684_s29 = sadd.s32 1, %s1529_s21   ;;  %s487_s23 = int_to_ptr.vmem [resolvable:$true] %s486_s23 }
  0x2b   : > { %s45_s30 = sadd.s32 1, %s1525_s20  ;;  %s42_s22 = ssub.s32 %s1529_s21, %s1684_s29 }
  0x2c   : > { %p52_p7 = scmp.ne.s32.totalorder %s1525_s20, %s1521_s19  ;;  %p43_p8 = scmp.eq.s32.totalorder %s42_s22, 0 }
  0x2d   : > { %s484_s16 = sshll.u32 %s1901_s11, 4  ;;  %p53_p9 = scmp.eq.s32.totalorder %s1529_s21, 0  ;;  %s485_s16 = int_to_ptr.hbm [resolvable:$true] %s484_s16 }
  0x2e   : > { %1136 = dma.hbm_to_vmem [thread:$0]  (!%p1659_p6), %s485_s16, 2048, %s487_s23, [#allocation12], %s1533_s13, %s1533_s13, %s1534_s15  }
  0x2f   : > { %p58_p10 = scmp.ne.s32.totalorder %s1521_s19, %s1517_s18  ;;  %p334_p11 = scmp.eq.s32.totalorder %s1642_s25, 1 }
  0x30   : > { %s1696_s5 = scalar_select %p43_p8, %s1525_s20, %s45_s30  }
  0x31   : > { %p1700_p12 = por %p59_p1, %p58_p10  ;;  %p1704_p13 = por %p334_p11, %p52_p7 }
  0x32   : > { %p340_p0 = scmp.eq.s32.totalorder %s1880_s27, 1  ;;  %p54_p2 = por %p53_p9, %p52_p7 }
  0x33   : > { %s503_s15 = sand.u32 1, %s1525_s20   ;;  %p1156_p6 = scmp.lt.s32.totalorder %s1529_s21, 2 }
  0x34   : > { %p1711_p4 = por %p340_p0, %p58_p10  ;;  %s1073_s8 = sshll.u32 %s503_s15, 3 }
  0x35   : > { %s1074_s24 = sshll.u32 %s1529_s21, 3  ;;  %s1905_s0 = sld [smem:[#allocation23_spill]] }
  0x36   : > { %s507_s30 = scalar_lea.vmem [#allocation2], %s1073_s8  ;;  %p1720_p8 = pnand %p1156_p6, %p54_p2 }
  0x37   : > { %s515_s22 = sshll.u32 %s507_s30, 4  ;;  %s504_s3 = scalar_lea.sflag [#allocation3], %s503_s15  ;;  %s516_s22 = int_to_ptr.vmem [resolvable:$true] %s515_s22 }
  0x38   : > { %p1365_p9 = pneg %p1720_p8 }
  0x3b   : > { %s511_s14 = scalar_lea.hbm %s1905_s0, %s1074_s24  ;;  %s1368_s8 = scalar_lea.hbm %s1905_s0, 16 }
  0x3c   : > { %s513_s23 = sshll.u32 %s511_s14, 4  ;;  %s514_s23 = int_to_ptr.hbm [resolvable:$true] %s513_s23 }
  0x3d   : > { %s1361_s7 = sshra.s32 %s514_s23, 4  ;;  %s1362_s7 = int_to_ptr.hbm [resolvable:$true] %s1361_s7 }
  0x3e   : > { %s1363_s11 = scalar_lea.hbm %s1362_s7, 8  ;;  %p1369_p0 = scmp.lt.s32.totalorder %s1362_s7, %s1905_s0 }
  0x3f   : > { %p1364_p7 = scmp.ne.s32.totalorder %s1362_s7, %s1363_s11  ;;  %p1370_p2 = scmp.lt.s32.totalorder %s1368_s8, %s1363_s11 }
  0x41   : > { %p1366_p10 = pnand %p1365_p9, %p1364_p7  ;;  %p1371_p6 = por %p1370_p2, %p1369_p0 }
  0x43   : > { %p1367_p11 = pneg %p1366_p10 }
  0x45   : > { %p1372_p5 = pnand %p1371_p6, %p1367_p11 }
  0x47   : > { %1375 = shalt.err (!%p1372_p5)
}
  0x48   : > { %1140 = dma.hbm_to_vmem [thread:$0]  (!%p1720_p8), %s514_s23, 128, %s516_s22, %s504_s3  }
  0x49   : > { %524 = sbr.rel (%p1647_p3) target bundleno = 653 (0x28d), region = 72  ;;  %s1737_s15 = sand.u32 (!%p1647_p3), 1, %s1521_s19  }
  0x4a   : > { %s1740_s30 = sshll.u32 (!%p1647_p3), %s1737_s15, 3  ;;  %s527_s7 = scalar_lea.sflag (!%p1647_p3), [#allocation3], %s1737_s15 }
  0x4b   : > { %s530_s11 = scalar_lea.vmem (!%p1647_p3), [#allocation2], %s1740_s30 }
  0x4e   : > { %1492 = dma.done.wait (%p1700_p12), %s527_s7, 128  }
  0x4f   : > { %1494 = vsyncadd (%p1700_p12), %s527_s7, 4294967168 }
  0x50   : > { %1496 = dma.done.wait (%p59_p1), [#allocation6], 4096  }
  0x51   : > { %1498 = vsyncadd (%p59_p1), [#allocation6], 4294963200 }
  0x52   : > { %1500 = dma.done.wait (%p59_p1), [#allocation9], 4096  }
  0x53   : > { %1502 = vsyncadd (%p59_p1), [#allocation9], 4294963200 }
  0x54   : > { %1504 = dma.done.wait (%p59_p1), [#allocation12], 2048  }
  0x55   : > { %1506 = vsyncadd (%p59_p1), [#allocation12], 4294965248  ;;  %v629_v0 = vld [vmem:[#allocation5 + $0x78] sm:$0xff]  ;;  %v628_v1 = vld [vmem:[#allocation5 + $0x70] sm:$0xff]  ;;  %s1907_s2 = sld [smem:[#allocation25_spill]]  ;;  %s1881_s8 = scalar_lea.vmem [#allocation16], %s1740_s30 }
  0x56   : > { %634 = vmatpush.msra.mxu0 %v629_v0  ;;  %v627_v2 = vld [vmem:[#allocation5 + $0x68] sm:$0xff]  ;;  %v626_v3 = vld [vmem:[#allocation5 + $0x60] sm:$0xff]  ;;  %v670_v4 = vld [vmem:[#allocation7 + $0x78] sm:$0xff]  ;;  %s1908_s4 = sld [smem:[#allocation27_spill]]  ;;  %s1784_s3 = sshll.u32 %s1642_s25, 3 }
  0x57   : > { %v625_v5 = vld [vmem:[#allocation5 + $0x58] sm:$0xff]  ;;  %675 = vmatpush.msra.mxu1 %v670_v4  ;;  %v669_v6 = vld [vmem:[#allocation7 + $0x70] sm:$0xff]  ;;  %v668_v7 = vld [vmem:[#allocation7 + $0x68] sm:$0xff]  ;;  %s1909_s6 = sld [smem:[#allocation29_spill]]  ;;  %s605_s22 = scalar_lea.vmem [#allocation14], %s1740_s30 }
  0x58   : > { %635 = vmatpush.msra.mxu0 %v628_v1  ;;  %v624_v8 = vld [vmem:[#allocation5 + $0x50] sm:$0xff]  ;;  %v623_v9 = vld [vmem:[#allocation5 + $0x48] sm:$0xff]  ;;  %v667_v10 = vld [vmem:[#allocation7 + $0x60] sm:$0xff]  ;;  %s1910_s17 = sld [smem:[#allocation34_spill]]  ;;  %s835_s24 = sand.u32 1, %s1642_s25  }
  0x59   : > { %676 = vmatpush.msra.mxu1 %v669_v6  ;;  %v666_v11 = vld [vmem:[#allocation7 + $0x58] sm:$0xff]  ;;  %v622_v12 = vld [vmem:[#allocation5 + $0x40] sm:$0xff]  ;;  %v665_v13 = vld [vmem:[#allocation7 + $0x50] sm:$0xff]  ;;  %s867_s28 = sshll.u32 %s605_s22, 4  ;;  %s1792_s14 = scalar_lea.sflag [#allocation15], %s835_s24  ;;  %s868_s28 = int_to_ptr.vmem [resolvable:$true] %s867_s28 }
  0x5a   : > { %636 = vmatpush.msra.mxu0 %v627_v2  ;;  %v621_v14 = vld [vmem:[#allocation5 + $0x38] sm:$0xff]  ;;  %v664_v15 = vld [vmem:[#allocation7 + $0x48] sm:$0xff]  ;;  %v620_v16 = vld [vmem:[#allocation5 + $0x30] sm:$0xff] }
  0x5b   : > { %677 = vmatpush.msra.mxu1 %v668_v7  ;;  %v663_v17 = vld [vmem:[#allocation7 + $0x40] sm:$0xff]  ;;  %v619_v18 = vld [vmem:[#allocation5 + $0x28] sm:$0xff]  ;;  %v662_v19 = vld [vmem:[#allocation7 + $0x38] sm:$0xff] }
  0x5c   : > { %637 = vmatpush.msra.mxu0 %v626_v3  ;;  %v618_v20 = vld [vmem:[#allocation5 + $0x20] sm:$0xff]  ;;  %v661_v21 = vld [vmem:[#allocation7 + $0x30] sm:$0xff]  ;;  %v617_v22 = vld [vmem:[#allocation5 + $0x18] sm:$0xff] }
  0x5d   : > { %678 = vmatpush.msra.mxu1 %v667_v10  ;;  %v660_v23 = vld [vmem:[#allocation7 + $0x28] sm:$0xff]  ;;  %v616_v24 = vld [vmem:[#allocation5 + $0x10] sm:$0xff]  ;;  %v659_v25 = vld [vmem:[#allocation7 + $0x20] sm:$0xff] }
  0x5e   : > { %638 = vmatpush.msra.mxu0 %v625_v5  ;;  %v615_v26 = vld [vmem:[#allocation5 + $0x8] sm:$0xff]  ;;  %v658_v27 = vld [vmem:[#allocation7 + $0x18] sm:$0xff]  ;;  %v614_v28 = vld [vmem:[#allocation5] sm:$0xff]  ;;  %s865_s23 = scalar_lea.hbm %s1910_s17, %s1784_s3 }
  0x5f   : > { %679 = vmatpush.msra.mxu1 %v666_v11  ;;  %v613_v29 = vld [vmem:[%s530_s11] sm:$0xff]  ;;  %v656_v31 = vld [vmem:[#allocation7 + $0x8] sm:$0xff]  ;;  %v655_v32 = vld [vmem:[#allocation7] sm:$0xff]  ;;  %s869_s16 = sshll.u32 %s865_s23, 4  ;;  %s870_s16 = int_to_ptr.hbm [resolvable:$true] %s869_s16 }
  0x60   : > { %639 = vmatpush.msra.mxu0 %v624_v8  ;;  %v657_v30 = vld [vmem:[#allocation7 + $0x10] sm:$0xff]  ;;  %v722_v33 = vld [vmem:[#allocation11 + $0x78] sm:$0xff]  ;;  %v720_v37 = vld [vmem:[#allocation11 + $0x68] sm:$0xff]  ;;  %s1405_s7 = sshra.s32 %s870_s16, 4  ;;  %s1406_s7 = int_to_ptr.hbm [resolvable:$true] %s1405_s7 }
  0x61   : > { %680 = vmatpush.msra.mxu1 %v665_v13  ;;  %v763_v34 = vld [vmem:[#allocation8 + $0x78] sm:$0xff]  ;;  %v721_v35 = vld [vmem:[#allocation11 + $0x70] sm:$0xff]  ;;  %727 = vmatpush.msra.mxu2 %v722_v33  ;;  %v761_v38 = vld [vmem:[#allocation8 + $0x68] sm:$0xff]  ;;  %s1407_s11 = scalar_lea.hbm %s1406_s7, 8  ;;  %p1412_p12 = scmp.lt.s32.totalorder %s1406_s7, %s1910_s17 }
  0x62   : > { %640 = vmatpush.msra.mxu0 %v623_v9  ;;  %768 = vmatpush.msra.mxu3 %v763_v34  ;;  %v762_v36 = vld [vmem:[#allocation8 + $0x70] sm:$0xff]  ;;  %v719_v39 = vld [vmem:[#allocation11 + $0x60] sm:$0xff]  ;;  %v718_v41 = vld [vmem:[#allocation11 + $0x58] sm:$0xff]  ;;  %p1408_p1 = scmp.ne.s32.totalorder %s1406_s7, %s1407_s11 }
  0x63   : > { %681 = vmatpush.msra.mxu1 %v664_v15  ;;  %728 = vmatpush.msra.mxu2 %v721_v35  ;;  %v760_v40 = vld [vmem:[#allocation8 + $0x60] sm:$0xff]  ;;  %v759_v42 = vld [vmem:[#allocation8 + $0x58] sm:$0xff]  ;;  %v717_v43 = vld [vmem:[#allocation11 + $0x50] sm:$0xff] }
  0x64   : > { %641 = vmatpush.msra.mxu0 %v622_v12  ;;  %769 = vmatpush.msra.mxu3 %v762_v36  ;;  %v758_v44 = vld [vmem:[#allocation8 + $0x50] sm:$0xff]  ;;  %v716_v45 = vld [vmem:[#allocation11 + $0x48] sm:$0xff]  ;;  %v715_v47 = vld [vmem:[#allocation11 + $0x40] sm:$0xff]  ;;  %p1409_p3 = pnand %p1408_p1, %p1704_p13 }
  0x65   : > { %682 = vmatpush.msra.mxu1 %v663_v17  ;;  %729 = vmatpush.msra.mxu2 %v720_v37  ;;  %v757_v46 = vld [vmem:[#allocation8 + $0x48] sm:$0xff]  ;;  %v756_v48 = vld [vmem:[#allocation8 + $0x40] sm:$0xff]  ;;  %v714_v49 = vld [vmem:[#allocation11 + $0x38] sm:$0xff] }
  0x66   : > { %642 = vmatpush.msra.mxu0 %v621_v14  ;;  %770 = vmatpush.msra.mxu3 %v761_v38  ;;  %v755_v50 = vld [vmem:[#allocation8 + $0x38] sm:$0xff]  ;;  %v1202_v51 = vld [vmem:[%s1907_s2] ss:$0 sm:$0xff]  ;;  %v712_v57 = vld [vmem:[#allocation11 + $0x28] sm:$0xff]  ;;  %p1410_p5 = pneg %p1409_p3 }
  0x67   : > { %683 = vmatpush.msra.mxu1 %v662_v19  ;;  %730 = vmatpush.msra.mxu2 %v719_v39  ;;  %v713_v55 = vld [vmem:[#allocation11 + $0x30] sm:$0xff]  ;;  %v753_v58 = vld [vmem:[#allocation8 + $0x28] sm:$0xff]  ;;  %v711_v59 = vld [vmem:[#allocation11 + $0x20] sm:$0xff] }
  0x68   : > { %643 = vmatpush.msra.mxu0 %v620_v16  ;;  %771 = vmatpush.msra.mxu3 %v760_v40  ;;  %v754_v56 = vld [vmem:[#allocation8 + $0x30] sm:$0xff]  ;;  %v752_v60 = vld [vmem:[#allocation8 + $0x20] sm:$0xff]  ;;  %v710_v61 = vld [vmem:[#allocation11 + $0x18] sm:$0xff] }
  0x69   : > { %684 = vmatpush.msra.mxu1 %v661_v21  ;;  %731 = vmatpush.msra.mxu2 %v718_v41  ;;  %v751_v62 = vld [vmem:[#allocation8 + $0x18] sm:$0xff]  ;;  %v709_v63 = vld [vmem:[#allocation11 + $0x10] sm:$0xff]  ;;  %v708_v1 = vld [vmem:[#allocation11 + $0x8] sm:$0xff] }
  0x6a   : > { %644 = vmatpush.msra.mxu0 %v619_v18  ;;  %772 = vmatpush.msra.mxu3 %v759_v42  ;;  %v750_v0 = vld [vmem:[#allocation8 + $0x10] sm:$0xff]  ;;  %v749_v2 = vld [vmem:[#allocation8 + $0x8] sm:$0xff]  ;;  %v707_v3 = vld [vmem:[#allocation11] sm:$0xff] }
  0x6b   : > { %685 = vmatpush.msra.mxu1 %v660_v23  ;;  %732 = vmatpush.msra.mxu2 %v717_v43  ;;  %v748_v4 = vld [vmem:[#allocation8] sm:$0xff]  ;;  %v804_v5 = vld [vmem:[#allocation10 + $0x78] sm:$0xff]  ;;  %v803_v6 = vld [vmem:[#allocation10 + $0x70] sm:$0xff] }
  0x6c   : > { %645 = vmatpush.msra.mxu0 %v618_v20  ;;  %773 = vmatpush.msra.mxu3 %v758_v44  ;;  %v802_v7 = vld [vmem:[#allocation10 + $0x68] sm:$0xff]  ;;  %v801_v8 = vld [vmem:[#allocation10 + $0x60] sm:$0xff]  ;;  %v800_v9 = vld [vmem:[#allocation10 + $0x58] sm:$0xff] }
  0x6d   : > { %686 = vmatpush.msra.mxu1 %v659_v25  ;;  %733 = vmatpush.msra.mxu2 %v716_v45  ;;  %v799_v10 = vld [vmem:[#allocation10 + $0x50] sm:$0xff]  ;;  %v798_v11 = vld [vmem:[#allocation10 + $0x48] sm:$0xff]  ;;  %v797_v12 = vld [vmem:[#allocation10 + $0x40] sm:$0xff] }
  0x6e   : > { %646 = vmatpush.msra.mxu0 %v617_v22  ;;  %774 = vmatpush.msra.mxu3 %v757_v46  ;;  %v796_v13 = vld [vmem:[#allocation10 + $0x38] sm:$0xff]  ;;  %v1203_v14 = vld [vmem:[%s1908_s4] ss:$0 sm:$0xff]  ;;  %v794_v17 = vld [vmem:[#allocation10 + $0x28] sm:$0xff] }
  0x6f   : > { %687 = vmatpush.msra.mxu1 %v658_v27  ;;  %734 = vmatpush.msra.mxu2 %v715_v47  ;;  %v795_v15 = vld [vmem:[#allocation10 + $0x30] sm:$0xff]  ;;  %v793_v19 = vld [vmem:[#allocation10 + $0x20] sm:$0xff]  ;;  %v792_v20 = vld [vmem:[#allocation10 + $0x18] sm:$0xff] }
  0x70   : > { %647 = vmatpush.msra.mxu0 %v616_v24  ;;  %775 = vmatpush.msra.mxu3 %v756_v48  ;;  %v1204_v21 = vld [vmem:[%s1870_s9] ss:$0 sm:$0xff]  ;;  %v790_v27 = vld [vmem:[#allocation10 + $0x8] sm:$0xff] }
  0x71   : > { %688 = vmatpush.msra.mxu1 %v657_v30  ;;  %735 = vmatpush.msra.mxu2 %v714_v49  ;;  %v1205_v22 = vld [vmem:[%s1871_s10] ss:$0 sm:$0xff] }
  0x72   : > { %648 = vmatpush.msra.mxu0 %v615_v26  ;;  %776 = vmatpush.msra.mxu3 %v755_v50  ;;  %v791_v26 = vld [vmem:[#allocation10 + $0x10] sm:$0xff] }
  0x73   : > { %689 = vmatpush.msra.mxu1 %v656_v31  ;;  %736 = vmatpush.msra.mxu2 %v713_v55  ;;  %v1207_v30 = vld [vmem:[%s1909_s6] ss:$0 sm:$0xff] }
  0x74   : > { %649 = vmatpush.msra.mxu0 %v614_v28  ;;  %777 = vmatpush.msra.mxu3 %v754_v56  ;;  %v789_v28 = vld [vmem:[#allocation10] sm:$0xff] }
  0x75   : > { %650 = vmatmul.f32.vlgmr.msra.gmra.mxu0 %v613_v29  ;;  %690 = vmatpush.msra.mxu1 %v655_v32  ;;  %v1206_v29 = vld [vmem:[%s1873_s12] ss:$0 sm:$0xff] }
  0x76   : > { %737 = vmatpush.msra.mxu2 %v712_v57  ;;  %778 = vmatpush.msra.mxu3 %v753_v58 }
  0x77   : > { %809 = vmatpush.msrb.mxu0 %v804_v5 }
  0x78   : > { %738 = vmatpush.msra.mxu2 %v711_v59  ;;  %779 = vmatpush.msra.mxu3 %v752_v60 }
  0x79   : > { %810 = vmatpush.msrb.mxu0 %v803_v6 }
  0x7a   : > { %739 = vmatpush.msra.mxu2 %v710_v61  ;;  %780 = vmatpush.msra.mxu3 %v751_v62 }
  0x7b   : > { %811 = vmatpush.msrb.mxu0 %v802_v7 }
  0x7c   : > { %740 = vmatpush.msra.mxu2 %v709_v63  ;;  %781 = vmatpush.msra.mxu3 %v750_v0 }
  0x7d   : > { %812 = vmatpush.msrb.mxu0 %v801_v8 }
  0x7e   : > { %741 = vmatpush.msra.mxu2 %v708_v1  ;;  %782 = vmatpush.msra.mxu3 %v749_v2 }
  0x7f   : > { %813 = vmatpush.msrb.mxu0 %v800_v9 }
  0x80   : > { %742 = vmatpush.msra.mxu2 %v707_v3  ;;  %783 = vmatpush.msra.mxu3 %v748_v4 }
  0x81   : > { %814 = vmatpush.msrb.mxu0 %v799_v10 }
  0x83   : > { %815 = vmatpush.msrb.mxu0 %v798_v11 }
  0x85   : > { %816 = vmatpush.msrb.mxu0 %v797_v12 }
  0x87   : > { %817 = vmatpush.msrb.mxu0 %v796_v13 }
  0x89   : > { %818 = vmatpush.msrb.mxu0 %v795_v15 }
  0x8b   : > { %819 = vmatpush.msrb.mxu0 %v794_v17 }
  0x8d   : > { %820 = vmatpush.msrb.mxu0 %v793_v19 }
  0x8f   : > { %821 = vmatpush.msrb.mxu0 %v792_v20 }
  0x91   : > { %822 = vmatpush.msrb.mxu0 %v791_v26 }
  0x93   : > { %823 = vmatpush.msrb.mxu0 %v790_v27 }
  0x95   : > { %824 = vmatpush.msrb.mxu0 %v789_v28 }
  0xf2   : > { %v651_v52 = vpop.f32.mrf.mxu0 }
  0xf3   : > { %v652_v53 = vadd.f32 %v1202_v51, %v651_v52 }
  0xf5   : > { %v654_v54 = vmax.f32 %v652_v53, 0.0 }
  0xf7   : > { %691 = vmatmul.f32.vlgmr.msra.gmra.mxu1 %v654_v54 }
 0x174   : > { %v692_v16 = vpop.f32.mrf.mxu1 }
 0x175   : > { %v693_v18 = vadd.f32 %v1203_v14, %v692_v16 }
 0x177   : > { %1209 = vtanh.f32 %v693_v18 }
 0x17d   : > { %v1210_v23 = vpop.eup %1209 }
 0x17e   : > { %v700_v24 = vmul.f32 %v1210_v23, %v1204_v21 }
 0x180   : > { %v705_v25 = vadd.f32 %v1205_v22, %v700_v24 }
 0x182   : > { %743 = vmatmul.f32.vlgmr.msra.gmra.mxu2 %v705_v25  ;;  %784 = vmatmul.f32.vlgmr.msra.gmra.mxu3 %v705_v25  ;;  %706 = vst [vmem:[%s1881_s8] sm:$0xff] %v705_v25  ;;  %s1411_s8 = scalar_lea.hbm %s1910_s17, 16 }
 0x183   : > { %p1413_p8 = scmp.lt.s32.totalorder %s1411_s8, %s1407_s11 }
 0x185   : > { %p1414_p7 = por %p1413_p8, %p1412_p12 }
 0x187   : > { %p1415_p9 = pnand %p1414_p7, %p1410_p5 }
 0x205   : > { %v744_v31 = vpop.f32.mrf.mxu2  ;;  %v785_v32 = vpop.f32.mrf.mxu3 }
 0x206   : > { %v745_v33 = vadd.f32 %v1206_v29, %v744_v31  ;;  %v786_v34 = vadd.f32 %v1207_v30, %v785_v32 }
 0x208   : > { %747 = vst [vmem:[%s605_s22] sm:$0xff] %v745_v33  ;;  %v788_v35 = vmax.f32 %v786_v34, 0.0 }
 0x20a   : > { %825 = vmatmul.f32.vlgmr.msrb.gmra.mxu0 %v788_v35 }
 0x20b   : > { %1418 = shalt.err (!%p1415_p9)
}
 0x20c   : > { %1116 = dma.vmem_to_hbm [thread:$0]  (%p1704_p13), %s868_s28, 128, %s870_s16, %s1792_s14  }
 0x20d   : > { %s1911_s24 = sld [smem:[#allocation35_spill]]  ;;  %s1912_s27 = scalar_lea.vmem [#allocation16], %s1740_s30 }
 0x20e   : > { %s881_s2 = sshll.u32 %s1912_s27, 4  ;;  %s882_s2 = int_to_ptr.vmem [resolvable:$true] %s881_s2 }
 0x213   : > { %s879_s26 = scalar_lea.hbm %s1911_s24, %s1784_s3  ;;  %s1439_s28 = scalar_lea.hbm %s1911_s24, 16 }
 0x214   : > { %s883_s0 = sshll.u32 %s879_s26, 4  ;;  %s884_s0 = int_to_ptr.hbm [resolvable:$true] %s883_s0 }
 0x215   : > { %s1433_s8 = sshra.s32 %s884_s0, 4  ;;  %s1434_s8 = int_to_ptr.hbm [resolvable:$true] %s1433_s8 }
 0x216   : > { %s1435_s7 = scalar_lea.hbm %s1434_s8, 8  ;;  %p1440_p2 = scmp.lt.s32.totalorder %s1434_s8, %s1911_s24 }
 0x217   : > { %p1436_p10 = scmp.ne.s32.totalorder %s1434_s8, %s1435_s7  ;;  %p1441_p6 = scmp.lt.s32.totalorder %s1439_s28, %s1435_s7 }
 0x219   : > { %p1437_p11 = pnand %p1436_p10, %p1704_p13  ;;  %p1442_p1 = por %p1441_p6, %p1440_p2 }
 0x21b   : > { %p1438_p0 = pneg %p1437_p11 }
 0x21d   : > { %p1443_p3 = pnand %p1442_p1, %p1438_p0 }
 0x21f   : > { %1446 = shalt.err (!%p1443_p3)
}
 0x220   : > { %1117 = dma.vmem_to_hbm [thread:$0]  (%p1704_p13), %s882_s2, 128, %s884_s0, %s1792_s14  }
 0x221   : > { %s1913_s26 = sld [smem:[#allocation33_spill]]  ;;  %s598_s8 = scalar_lea.vmem [#allocation13], %s1740_s30 }
 0x222   : > { %s1914_s4 = sld [smem:[#allocation31_spill]]  ;;  %s853_s7 = sshll.u32 %s598_s8, 4  ;;  %s854_s7 = int_to_ptr.vmem [resolvable:$true] %s853_s7 }
 0x223   : > { %s831_s16 = scalar_lea.sflag [#allocation4], %s1737_s15 }
 0x227   : > { %s851_s27 = scalar_lea.hbm %s1913_s26, %s1784_s3  ;;  %s1467_s0 = scalar_lea.hbm %s1913_s26, 16 }
 0x228   : > { %v1208_v36 = vld [vmem:[%s1914_s4] ss:$0 sm:$0xff]  ;;  %s855_s28 = sshll.u32 %s851_s27, 4  ;;  %s856_s28 = int_to_ptr.hbm [resolvable:$true] %s855_s28 }
 0x229   : > { %s1461_s6 = sshra.s32 %s856_s28, 4  ;;  %s1462_s6 = int_to_ptr.hbm [resolvable:$true] %s1461_s6 }
 0x22a   : > { %s1463_s2 = scalar_lea.hbm %s1462_s6, 8  ;;  %p1468_p7 = scmp.lt.s32.totalorder %s1462_s6, %s1913_s26 }
 0x22b   : > { %p1464_p5 = scmp.ne.s32.totalorder %s1462_s6, %s1463_s2  ;;  %p1469_p9 = scmp.lt.s32.totalorder %s1467_s0, %s1463_s2 }
 0x22d   : > { %p1465_p12 = pnand %p1464_p5, %p1704_p13  ;;  %p1470_p10 = por %p1469_p9, %p1468_p7 }
 0x22f   : > { %p1466_p8 = pneg %p1465_p12 }
 0x231   : > { %p1471_p11 = pnand %p1470_p10, %p1466_p8 }
 0x287   : > { %v826_v37 = vpop.f32.mrf.mxu0 }
 0x288   : > { %v827_v38 = vadd.f32 %v1208_v36, %v826_v37 }
 0x28a   : > { %829 = vst [vmem:[%s598_s8] sm:$0xff] %v827_v38 }
 0x28b   : > { %1474 = shalt.err (!%p1471_p11)
}
 0x28c   : > { %1115 = dma.vmem_to_hbm [thread:$0]  (%p1704_p13), %s854_s7, 128, %s856_s28, %s831_s16  }
 0x28d PF: > { %s895_s15 = sand.u32 1, %s1517_s18   ;;  %p1915_p0 = scmp.ge.s32.totalorder %s1529_s21, 2 }
 0x28e   : > { %s896_s22 = scalar_lea.sflag [#allocation4], %s895_s15 }
 0x28f   : > { %p1142_p2 = pnand %p1915_p0, %p1711_p4 }
 0x291   : > { %p1143_p6 = pneg %p1142_p2 }
 0x293   : > { %1508 = dma.done.wait (%p1143_p6), %s896_s22, 128  }
 0x294   : > { %1510 = vsyncadd (%p1143_p6), %s896_s22, 4294967168  ;;  %s1916_s6 = sadd.s32 4294967294, %s1529_s21  }
 0x295   : > { %s905_s27 = sand.u32 1, %s1916_s6  }
 0x296   : > { %s906_s11 = scalar_lea.sflag [#allocation15], %s905_s27 }
 0x297   : > { %1512 = dma.done.wait (%p1143_p6), %s906_s11, 256  }
 0x298   : > { %1514 = vsyncadd (%p1143_p6), %s906_s11, 4294967040  ;;  %p35_p13 = scmp.ge.s32.totalorder %s1684_s29, 4   ;;  %s1917_s18 = smov %s1521_s19 }
 0x299   : > { %s1918_s19 = smov %s1525_s20  ;;  %s1919_s20 = smov %s1696_s5 }
 0x29a   : > { %s1920_s21 = smov %s1684_s29  ;;  %37 = sbr.rel (!%p35_p13) target bundleno = 24 (0x18), region = 169 }
 0x29f   :  { %922 = vsyncpa [#allocation3], 1 }
 0x2a0   :  { %924 = vsyncpa [#allocation3 + $0x1], 1 }
 0x2a1   :  { %925 = vsyncpa [#allocation6], 1 }
 0x2a2   :  { %926 = vsyncpa [#allocation9], 1 }
 0x2a3   :  { %927 = vsyncpa [#allocation12], 1 }
 0x2a4   :  { %928 = vsyncpa [#allocation4], 1 }
 0x2a5   :  { %930 = vsyncpa [#allocation4 + $0x1], 1 }
 0x2a6   :  { %931 = vsyncpa [#allocation15], 1 }
 0x2a7   :  { %933 = vsyncpa [#allocation15 + $0x1], 1 }

// kernel: tpu_custom_call.1
= control target key start
LH: loop header
LB: loop body
LE: loop exit
PB: predicated region body
PF: predicated region fallthrough
CT: control target
= control target key end

     0   :  { %s1861_s0 = inlined_call_operand.hbm [shape: f32[16,128], index: 0, kind: input, shape index: {}]   ;;  %s1862_s1 = inlined_call_operand.hbm [shape: f32[128,128], index: 1, kind: input, shape index: {}]   ;;  %s1863_s2 = inlined_call_operand.vmem [shape: f32[1,128], index: 2, kind: input, shape index: {}]   ;;  %s1864_s3 = inlined_call_operand.hbm [shape: f32[128,128], index: 3, kind: input, shape index: {}]   ;;  %s1865_s4 = inlined_call_operand.vmem [shape: f32[1,128], index: 4, kind: input, shape index: {}]   ;;  %s1866_s5 = inlined_call_operand.hbm [shape: f32[128,128], index: 5, kind: input, shape index: {}]   ;;  %s1867_s6 = inlined_call_operand.vmem [shape: f32[1,128], index: 6, kind: input, shape index: {}]   ;;  %s1868_s7 = inlined_call_operand.hbm [shape: f32[128,128], index: 7, kind: input, shape index: {}]   ;;  %s1869_s8 = inlined_call_operand.vmem [shape: f32[1,128], index: 8, kind: input, shape index: {}]   ;;  %s1870_s9 = inlined_call_operand.vmem [shape: f32[1,128], index: 9, kind: input, shape index: {}]   ;;  %s1871_s10 = inlined_call_operand.vmem [shape: f32[1,128], index: 10, kind: input, shape index: {}]   ;;  %s1872_s11 = inlined_call_operand.hbm [shape: f32[128,128], index: 11, kind: input, shape index: {}]   ;;  %s1873_s12 = inlined_call_operand.vmem [shape: f32[1,128], index: 12, kind: input, shape index: {}]   ;;  %s1874_s13 = inlined_call_operand.hbm [shape: f32[16,128], index: 13, kind: output, shape index: {0}]   ;;  %s1875_s14 = inlined_call_operand.hbm [shape: f32[16,128], index: 14, kind: output, shape index: {1}]   ;;  %s1876_s15 = inlined_call_operand.hbm [shape: f32[16,128], index: 15, kind: output, shape index: {2}]  }
   0x1   :  { %1882 = sst [smem:[#allocation23_spill]] %s1861_s0 }
   0x2   :  { %1883 = sst [smem:[#allocation24_spill]] %s1862_s1 }
   0x3   :  { %1884 = sst [smem:[#allocation25_spill]] %s1863_s2 }
   0x4   :  { %1885 = sst [smem:[#allocation26_spill]] %s1864_s3 }
   0x5   :  { %1886 = sst [smem:[#allocation27_spill]] %s1865_s4 }
   0x6   :  { %1887 = sst [smem:[#allocation28_spill]] %s1866_s5 }
   0x7   :  { %1888 = sst [smem:[#allocation29_spill]] %s1867_s6 }
   0x8   :  { %1889 = sst [smem:[#allocation30_spill]] %s1868_s7 }
   0x9   :  { %1890 = sst [smem:[#allocation31_spill]] %s1869_s8 }
   0xa   :  { %1891 = sst [smem:[#allocation32_spill]] %s1872_s11 }
   0xb   :  { %1892 = sst [smem:[#allocation33_spill]] %s1874_s13 }
   0xc   :  { %1893 = sst [smem:[#allocation34_spill]] %s1875_s14 }
   0xd   :  { %1894 = sst [smem:[#allocation35_spill]] %s1876_s15 }
   0xe   :  { %21 = vsyncpa [#allocation3], 0 }
   0xf   :  { %23 = vsyncpa [#allocation3 + $0x1], 0 }
  0x10   :  { %24 = vsyncpa [#allocation6], 0 }
  0x11   :  { %25 = vsyncpa [#allocation9], 0 }
  0x12   :  { %26 = vsyncpa [#allocation12], 0 }
  0x13   :  { %27 = vsyncpa [#allocation4], 0 }
  0x14   :  { %29 = vsyncpa [#allocation4 + $0x1], 0 }
  0x15   :  { %30 = vsyncpa [#allocation15], 0 }
  0x16   :  { %32 = vsyncpa [#allocation15 + $0x1], 0  ;;  %s1618_s18 = smov 0   ;;  %s1620_s19 = smov 0  }
  0x17   :  { %s1622_s20 = smov 0   ;;  %s1624_s21 = smov 0  }
  0x18 LB: > { %s1895_s1 = sld [smem:[#allocation24_spill]]  ;;  %s1642_s25 = sadd.s32 4294967295, %s1529_s21   ;;  %s1529_s21 = sphi %s1624_s21, %s1920_s21   ;;  %s1525_s20 = sphi %s1622_s20, %s1919_s20   ;;  %s1521_s19 = sphi %s1620_s19, %s1918_s19   ;;  %s1517_s18 = sphi %s1618_s18, %s1917_s18  }
  0x19   : > { %p1066_p0 = scmp.ge.s32.totalorder %s1529_s21, 1  ;;  %p59_p1 = scmp.eq.s32.totalorder %s1642_s25, 0 }
  0x1a   : > { %p399_p2 = scmp.lt.s32.totalorder %s1529_s21, 3  ;;  %s1531_s27 = smov [#allocation5]  }
  0x1b   : > { %s412_s28 = sshll.u32 %s1531_s27, 4  ;;  %s1897_s5 = sld [smem:[#allocation28_spill]]  ;;  %s413_s28 = int_to_ptr.vmem [resolvable:$true] %s412_s28 }
  0x1c   : > { %p1647_p3 = pnand %p1066_p0, %p399_p2  ;;  %s1899_s3 = sld [smem:[#allocation26_spill]] }
  0x1d   : > { %s1533_s13 = smov 128   ;;  %s1534_s15 = smov 8  }
  0x1e   : > { %s410_s24 = sshll.u32 %s1895_s1, 4  ;;  %p1121_p4 = pneg %p1647_p3  ;;  %s411_s24 = int_to_ptr.hbm [resolvable:$true] %s410_s24 }
  0x1f   : > { %s1532_s1 = smov [#allocation8]   ;;  %s1900_s7 = sld [smem:[#allocation30_spill]] }
  0x20   : > { %p1659_p6 = pnand %p1121_p4, %p59_p1  ;;  %s446_s8 = sshll.u32 %s1532_s1, 4  ;;  %s447_s8 = int_to_ptr.vmem [resolvable:$true] %s446_s8 }
  0x21   : > { %s444_s16 = sshll.u32 %s1897_s5, 4  ;;  %s1535_s14 = smov [#allocation7]   ;;  %s445_s16 = int_to_ptr.hbm [resolvable:$true] %s444_s16 }
  0x22   : > { %s427_s27 = sshll.u32 %s1899_s3, 4  ;;  %s429_s22 = sshll.u32 %s1535_s14, 4  ;;  %s428_s27 = int_to_ptr.hbm [resolvable:$true] %s427_s27  ;;  %s430_s22 = int_to_ptr.vmem [resolvable:$true] %s429_s22 }
  0x23   : > { %1124 = dma.hbm_to_vmem [thread:$0]  (!%p1659_p6), %s411_s24, 2048, %s413_s28, [#allocation6], %s1533_s13, %s1533_s13, %s1534_s15  }
  0x24   : > { %1130 = dma.hbm_to_vmem [thread:$0]  (!%p1659_p6), %s445_s16, 2048, %s447_s8, [#allocation9], %s1533_s13, %s1533_s13, %s1534_s15  }
  0x25   : > { %s461_s5 = sshll.u32 %s1900_s7, 4  ;;  %s1536_s1 = smov [#allocation10]   ;;  %s462_s5 = int_to_ptr.hbm [resolvable:$true] %s461_s5 }
  0x26   : > { %1127 = dma.hbm_to_vmem [thread:$0]  (!%p1659_p6), %s428_s27, 2048, %s430_s22, [#allocation6], %s1533_s13, %s1533_s13, %s1534_s15  }
  0x27   : > { %s463_s8 = sshll.u32 %s1536_s1, 4  ;;  %s1901_s11 = sld [smem:[#allocation32_spill]]  ;;  %s464_s8 = int_to_ptr.vmem [resolvable:$true] %s463_s8 }
  0x28   : > { %1133 = dma.hbm_to_vmem [thread:$0]  (!%p1659_p6), %s462_s5, 2048, %s464_s8, [#allocation9], %s1533_s13, %s1533_s13, %s1534_s15  }
  0x29   : > { %s1537_s14 = smov [#allocation11]   ;;  %s1880_s27 = sadd.s32 4294967294, %s1529_s21  }
  0x2a   : > { %s486_s23 = sshll.u32 %s1537_s14, 4  ;;  %s1684_s29 = sadd.s32 1, %s1529_s21   ;;  %s487_s23 = int_to_ptr.vmem [resolvable:$true] %s486_s23 }
  0x2b   : > { %s45_s30 = sadd.s32 1, %s1525_s20  ;;  %s42_s22 = ssub.s32 %s1529_s21, %s1684_s29 }
  0x2c   : > { %p52_p7 = scmp.ne.s32.totalorder %s1525_s20, %s1521_s19  ;;  %p43_p8 = scmp.eq.s32.totalorder %s42_s22, 0 }
  0x2d   : > { %s484_s16 = sshll.u32 %s1901_s11, 4  ;;  %p53_p9 = scmp.eq.s32.totalorder %s1529_s21, 0  ;;  %s485_s16 = int_to_ptr.hbm [resolvable:$true] %s484_s16 }
  0x2e   : > { %1136 = dma.hbm_to_vmem [thread:$0]  (!%p1659_p6), %s485_s16, 2048, %s487_s23, [#allocation12], %s1533_s13, %s1533_s13, %s1534_s15  }
  0x2f   : > { %p58_p10 = scmp.ne.s32.totalorder %s1521_s19, %s1517_s18  ;;  %p334_p11 = scmp.eq.s32.totalorder %s1642_s25, 1 }
  0x30   : > { %s1696_s5 = scalar_select %p43_p8, %s1525_s20, %s45_s30  }
  0x31   : > { %p1700_p12 = por %p59_p1, %p58_p10  ;;  %p1704_p13 = por %p334_p11, %p52_p7 }
  0x32   : > { %p340_p0 = scmp.eq.s32.totalorder %s1880_s27, 1  ;;  %p54_p2 = por %p53_p9, %p52_p7 }
  0x33   : > { %s503_s15 = sand.u32 1, %s1525_s20   ;;  %p1156_p6 = scmp.lt.s32.totalorder %s1529_s21, 2 }
  0x34   : > { %p1711_p4 = por %p340_p0, %p58_p10  ;;  %s1073_s8 = sshll.u32 %s503_s15, 3 }
  0x35   : > { %s1074_s24 = sshll.u32 %s1529_s21, 3  ;;  %s1905_s0 = sld [smem:[#allocation23_spill]] }
  0x36   : > { %s507_s30 = scalar_lea.vmem [#allocation2], %s1073_s8  ;;  %p1720_p8 = pnand %p1156_p6, %p54_p2 }
  0x37   : > { %s515_s22 = sshll.u32 %s507_s30, 4  ;;  %s504_s3 = scalar_lea.sflag [#allocation3], %s503_s15  ;;  %s516_s22 = int_to_ptr.vmem [resolvable:$true] %s515_s22 }
  0x38   : > { %p1365_p9 = pneg %p1720_p8 }
  0x3b   : > { %s511_s14 = scalar_lea.hbm %s1905_s0, %s1074_s24  ;;  %s1368_s8 = scalar_lea.hbm %s1905_s0, 16 }
  0x3c   : > { %s513_s23 = sshll.u32 %s511_s14, 4  ;;  %s514_s23 = int_to_ptr.hbm [resolvable:$true] %s513_s23 }
  0x3d   : > { %s1361_s7 = sshra.s32 %s514_s23, 4  ;;  %s1362_s7 = int_to_ptr.hbm [resolvable:$true] %s1361_s7 }
  0x3e   : > { %s1363_s11 = scalar_lea.hbm %s1362_s7, 8  ;;  %p1369_p0 = scmp.lt.s32.totalorder %s1362_s7, %s1905_s0 }
  0x3f   : > { %p1364_p7 = scmp.ne.s32.totalorder %s1362_s7, %s1363_s11  ;;  %p1370_p2 = scmp.lt.s32.totalorder %s1368_s8, %s1363_s11 }
  0x41   : > { %p1366_p10 = pnand %p1365_p9, %p1364_p7  ;;  %p1371_p6 = por %p1370_p2, %p1369_p0 }
  0x43   : > { %p1367_p11 = pneg %p1366_p10 }
  0x45   : > { %p1372_p5 = pnand %p1371_p6, %p1367_p11 }
  0x47   : > { %1375 = shalt.err (!%p1372_p5)
}
  0x48   : > { %1140 = dma.hbm_to_vmem [thread:$0]  (!%p1720_p8), %s514_s23, 128, %s516_s22, %s504_s3  }
  0x49   : > { %524 = sbr.rel (%p1647_p3) target bundleno = 653 (0x28d), region = 72  ;;  %s1737_s15 = sand.u32 (!%p1647_p3), 1, %s1521_s19  }
  0x4a   : > { %s1740_s30 = sshll.u32 (!%p1647_p3), %s1737_s15, 3  ;;  %s527_s7 = scalar_lea.sflag (!%p1647_p3), [#allocation3], %s1737_s15 }
  0x4b   : > { %s530_s11 = scalar_lea.vmem (!%p1647_p3), [#allocation2], %s1740_s30 }
  0x4e   : > { %1492 = dma.done.wait (%p1700_p12), %s527_s7, 128  }
  0x4f   : > { %1494 = vsyncadd (%p1700_p12), %s527_s7, 4294967168 }
  0x50   : > { %1496 = dma.done.wait (%p59_p1), [#allocation6], 4096  }
  0x51   : > { %1498 = vsyncadd (%p59_p1), [#allocation6], 4294963200 }
  0x52   : > { %1500 = dma.done.wait (%p59_p1), [#allocation9], 4096  }
  0x53   : > { %1502 = vsyncadd (%p59_p1), [#allocation9], 4294963200 }
  0x54   : > { %1504 = dma.done.wait (%p59_p1), [#allocation12], 2048  }
  0x55   : > { %1506 = vsyncadd (%p59_p1), [#allocation12], 4294965248  ;;  %v629_v0 = vld [vmem:[#allocation5 + $0x78] sm:$0xff]  ;;  %v628_v1 = vld [vmem:[#allocation5 + $0x70] sm:$0xff]  ;;  %s1907_s2 = sld [smem:[#allocation25_spill]]  ;;  %s1881_s8 = scalar_lea.vmem [#allocation16], %s1740_s30 }
  0x56   : > { %634 = vmatpush.msra.mxu0 %v629_v0  ;;  %v627_v2 = vld [vmem:[#allocation5 + $0x68] sm:$0xff]  ;;  %v626_v3 = vld [vmem:[#allocation5 + $0x60] sm:$0xff]  ;;  %v670_v4 = vld [vmem:[#allocation7 + $0x78] sm:$0xff]  ;;  %s1908_s4 = sld [smem:[#allocation27_spill]]  ;;  %s1784_s3 = sshll.u32 %s1642_s25, 3 }
  0x57   : > { %v625_v5 = vld [vmem:[#allocation5 + $0x58] sm:$0xff]  ;;  %675 = vmatpush.msra.mxu1 %v670_v4  ;;  %v669_v6 = vld [vmem:[#allocation7 + $0x70] sm:$0xff]  ;;  %v668_v7 = vld [vmem:[#allocation7 + $0x68] sm:$0xff]  ;;  %s1909_s6 = sld [smem:[#allocation29_spill]]  ;;  %s605_s22 = scalar_lea.vmem [#allocation14], %s1740_s30 }
  0x58   : > { %635 = vmatpush.msra.mxu0 %v628_v1  ;;  %v624_v8 = vld [vmem:[#allocation5 + $0x50] sm:$0xff]  ;;  %v623_v9 = vld [vmem:[#allocation5 + $0x48] sm:$0xff]  ;;  %v667_v10 = vld [vmem:[#allocation7 + $0x60] sm:$0xff]  ;;  %s1910_s17 = sld [smem:[#allocation34_spill]]  ;;  %s835_s24 = sand.u32 1, %s1642_s25  }
  0x59   : > { %676 = vmatpush.msra.mxu1 %v669_v6  ;;  %v666_v11 = vld [vmem:[#allocation7 + $0x58] sm:$0xff]  ;;  %v622_v12 = vld [vmem:[#allocation5 + $0x40] sm:$0xff]  ;;  %v665_v13 = vld [vmem:[#allocation7 + $0x50] sm:$0xff]  ;;  %s867_s28 = sshll.u32 %s605_s22, 4  ;;  %s1792_s14 = scalar_lea.sflag [#allocation15], %s835_s24  ;;  %s868_s28 = int_to_ptr.vmem [resolvable:$true] %s867_s28 }
  0x5a   : > { %636 = vmatpush.msra.mxu0 %v627_v2  ;;  %v621_v14 = vld [vmem:[#allocation5 + $0x38] sm:$0xff]  ;;  %v664_v15 = vld [vmem:[#allocation7 + $0x48] sm:$0xff]  ;;  %v620_v16 = vld [vmem:[#allocation5 + $0x30] sm:$0xff] }
  0x5b   : > { %677 = vmatpush.msra.mxu1 %v668_v7  ;;  %v663_v17 = vld [vmem:[#allocation7 + $0x40] sm:$0xff]  ;;  %v619_v18 = vld [vmem:[#allocation5 + $0x28] sm:$0xff]  ;;  %v662_v19 = vld [vmem:[#allocation7 + $0x38] sm:$0xff] }
  0x5c   : > { %637 = vmatpush.msra.mxu0 %v626_v3  ;;  %v618_v20 = vld [vmem:[#allocation5 + $0x20] sm:$0xff]  ;;  %v661_v21 = vld [vmem:[#allocation7 + $0x30] sm:$0xff]  ;;  %v617_v22 = vld [vmem:[#allocation5 + $0x18] sm:$0xff] }
  0x5d   : > { %678 = vmatpush.msra.mxu1 %v667_v10  ;;  %v660_v23 = vld [vmem:[#allocation7 + $0x28] sm:$0xff]  ;;  %v616_v24 = vld [vmem:[#allocation5 + $0x10] sm:$0xff]  ;;  %v659_v25 = vld [vmem:[#allocation7 + $0x20] sm:$0xff] }
  0x5e   : > { %638 = vmatpush.msra.mxu0 %v625_v5  ;;  %v615_v26 = vld [vmem:[#allocation5 + $0x8] sm:$0xff]  ;;  %v658_v27 = vld [vmem:[#allocation7 + $0x18] sm:$0xff]  ;;  %v614_v28 = vld [vmem:[#allocation5] sm:$0xff]  ;;  %s865_s23 = scalar_lea.hbm %s1910_s17, %s1784_s3 }
  0x5f   : > { %679 = vmatpush.msra.mxu1 %v666_v11  ;;  %v613_v29 = vld [vmem:[%s530_s11] sm:$0xff]  ;;  %v656_v31 = vld [vmem:[#allocation7 + $0x8] sm:$0xff]  ;;  %v655_v32 = vld [vmem:[#allocation7] sm:$0xff]  ;;  %s869_s16 = sshll.u32 %s865_s23, 4  ;;  %s870_s16 = int_to_ptr.hbm [resolvable:$true] %s869_s16 }
  0x60   : > { %639 = vmatpush.msra.mxu0 %v624_v8  ;;  %v657_v30 = vld [vmem:[#allocation7 + $0x10] sm:$0xff]  ;;  %v722_v33 = vld [vmem:[#allocation11 + $0x78] sm:$0xff]  ;;  %v720_v37 = vld [vmem:[#allocation11 + $0x68] sm:$0xff]  ;;  %s1405_s7 = sshra.s32 %s870_s16, 4  ;;  %s1406_s7 = int_to_ptr.hbm [resolvable:$true] %s1405_s7 }
  0x61   : > { %680 = vmatpush.msra.mxu1 %v665_v13  ;;  %v763_v34 = vld [vmem:[#allocation8 + $0x78] sm:$0xff]  ;;  %v721_v35 = vld [vmem:[#allocation11 + $0x70] sm:$0xff]  ;;  %727 = vmatpush.msra.mxu2 %v722_v33  ;;  %v761_v38 = vld [vmem:[#allocation8 + $0x68] sm:$0xff]  ;;  %s1407_s11 = scalar_lea.hbm %s1406_s7, 8  ;;  %p1412_p12 = scmp.lt.s32.totalorder %s1406_s7, %s1910_s17 }
  0x62   : > { %640 = vmatpush.msra.mxu0 %v623_v9  ;;  %768 = vmatpush.msra.mxu3 %v763_v34  ;;  %v762_v36 = vld [vmem:[#allocation8 + $0x70] sm:$0xff]  ;;  %v719_v39 = vld [vmem:[#allocation11 + $0x60] sm:$0xff]  ;;  %v718_v41 = vld [vmem:[#allocation11 + $0x58] sm:$0xff]  ;;  %p1408_p1 = scmp.ne.s32.totalorder %s1406_s7, %s1407_s11 }
  0x63   : > { %681 = vmatpush.msra.mxu1 %v664_v15  ;;  %728 = vmatpush.msra.mxu2 %v721_v35  ;;  %v760_v40 = vld [vmem:[#allocation8 + $0x60] sm:$0xff]  ;;  %v759_v42 = vld [vmem:[#allocation8 + $0x58] sm:$0xff]  ;;  %v717_v43 = vld [vmem:[#allocation11 + $0x50] sm:$0xff] }
  0x64   : > { %641 = vmatpush.msra.mxu0 %v622_v12  ;;  %769 = vmatpush.msra.mxu3 %v762_v36  ;;  %v758_v44 = vld [vmem:[#allocation8 + $0x50] sm:$0xff]  ;;  %v716_v45 = vld [vmem:[#allocation11 + $0x48] sm:$0xff]  ;;  %v715_v47 = vld [vmem:[#allocation11 + $0x40] sm:$0xff]  ;;  %p1409_p3 = pnand %p1408_p1, %p1704_p13 }
  0x65   : > { %682 = vmatpush.msra.mxu1 %v663_v17  ;;  %729 = vmatpush.msra.mxu2 %v720_v37  ;;  %v757_v46 = vld [vmem:[#allocation8 + $0x48] sm:$0xff]  ;;  %v756_v48 = vld [vmem:[#allocation8 + $0x40] sm:$0xff]  ;;  %v714_v49 = vld [vmem:[#allocation11 + $0x38] sm:$0xff] }
  0x66   : > { %642 = vmatpush.msra.mxu0 %v621_v14  ;;  %770 = vmatpush.msra.mxu3 %v761_v38  ;;  %v755_v50 = vld [vmem:[#allocation8 + $0x38] sm:$0xff]  ;;  %v1202_v51 = vld [vmem:[%s1907_s2] ss:$0 sm:$0xff]  ;;  %v712_v57 = vld [vmem:[#allocation11 + $0x28] sm:$0xff]  ;;  %p1410_p5 = pneg %p1409_p3 }
  0x67   : > { %683 = vmatpush.msra.mxu1 %v662_v19  ;;  %730 = vmatpush.msra.mxu2 %v719_v39  ;;  %v713_v55 = vld [vmem:[#allocation11 + $0x30] sm:$0xff]  ;;  %v753_v58 = vld [vmem:[#allocation8 + $0x28] sm:$0xff]  ;;  %v711_v59 = vld [vmem:[#allocation11 + $0x20] sm:$0xff] }
  0x68   : > { %643 = vmatpush.msra.mxu0 %v620_v16  ;;  %771 = vmatpush.msra.mxu3 %v760_v40  ;;  %v754_v56 = vld [vmem:[#allocation8 + $0x30] sm:$0xff]  ;;  %v752_v60 = vld [vmem:[#allocation8 + $0x20] sm:$0xff]  ;;  %v710_v61 = vld [vmem:[#allocation11 + $0x18] sm:$0xff] }
  0x69   : > { %684 = vmatpush.msra.mxu1 %v661_v21  ;;  %731 = vmatpush.msra.mxu2 %v718_v41  ;;  %v751_v62 = vld [vmem:[#allocation8 + $0x18] sm:$0xff]  ;;  %v709_v63 = vld [vmem:[#allocation11 + $0x10] sm:$0xff]  ;;  %v708_v1 = vld [vmem:[#allocation11 + $0x8] sm:$0xff] }
  0x6a   : > { %644 = vmatpush.msra.mxu0 %v619_v18  ;;  %772 = vmatpush.msra.mxu3 %v759_v42  ;;  %v750_v0 = vld [vmem:[#allocation8 + $0x10] sm:$0xff]  ;;  %v749_v2 = vld [vmem:[#allocation8 + $0x8] sm:$0xff]  ;;  %v707_v3 = vld [vmem:[#allocation11] sm:$0xff] }
  0x6b   : > { %685 = vmatpush.msra.mxu1 %v660_v23  ;;  %732 = vmatpush.msra.mxu2 %v717_v43  ;;  %v748_v4 = vld [vmem:[#allocation8] sm:$0xff]  ;;  %v804_v5 = vld [vmem:[#allocation10 + $0x78] sm:$0xff]  ;;  %v803_v6 = vld [vmem:[#allocation10 + $0x70] sm:$0xff] }
  0x6c   : > { %645 = vmatpush.msra.mxu0 %v618_v20  ;;  %773 = vmatpush.msra.mxu3 %v758_v44  ;;  %v802_v7 = vld [vmem:[#allocation10 + $0x68] sm:$0xff]  ;;  %v801_v8 = vld [vmem:[#allocation10 + $0x60] sm:$0xff]  ;;  %v800_v9 = vld [vmem:[#allocation10 + $0x58] sm:$0xff] }
  0x6d   : > { %686 = vmatpush.msra.mxu1 %v659_v25  ;;  %733 = vmatpush.msra.mxu2 %v716_v45  ;;  %v799_v10 = vld [vmem:[#allocation10 + $0x50] sm:$0xff]  ;;  %v798_v11 = vld [vmem:[#allocation10 + $0x48] sm:$0xff]  ;;  %v797_v12 = vld [vmem:[#allocation10 + $0x40] sm:$0xff] }
  0x6e   : > { %646 = vmatpush.msra.mxu0 %v617_v22  ;;  %774 = vmatpush.msra.mxu3 %v757_v46  ;;  %v796_v13 = vld [vmem:[#allocation10 + $0x38] sm:$0xff]  ;;  %v1203_v14 = vld [vmem:[%s1908_s4] ss:$0 sm:$0xff]  ;;  %v794_v17 = vld [vmem:[#allocation10 + $0x28] sm:$0xff] }
  0x6f   : > { %687 = vmatpush.msra.mxu1 %v658_v27  ;;  %734 = vmatpush.msra.mxu2 %v715_v47  ;;  %v795_v15 = vld [vmem:[#allocation10 + $0x30] sm:$0xff]  ;;  %v793_v19 = vld [vmem:[#allocation10 + $0x20] sm:$0xff]  ;;  %v792_v20 = vld [vmem:[#allocation10 + $0x18] sm:$0xff] }
  0x70   : > { %647 = vmatpush.msra.mxu0 %v616_v24  ;;  %775 = vmatpush.msra.mxu3 %v756_v48  ;;  %v1204_v21 = vld [vmem:[%s1870_s9] ss:$0 sm:$0xff]  ;;  %v790_v27 = vld [vmem:[#allocation10 + $0x8] sm:$0xff] }
  0x71   : > { %688 = vmatpush.msra.mxu1 %v657_v30  ;;  %735 = vmatpush.msra.mxu2 %v714_v49  ;;  %v1205_v22 = vld [vmem:[%s1871_s10] ss:$0 sm:$0xff] }
  0x72   : > { %648 = vmatpush.msra.mxu0 %v615_v26  ;;  %776 = vmatpush.msra.mxu3 %v755_v50  ;;  %v791_v26 = vld [vmem:[#allocation10 + $0x10] sm:$0xff] }
  0x73   : > { %689 = vmatpush.msra.mxu1 %v656_v31  ;;  %736 = vmatpush.msra.mxu2 %v713_v55  ;;  %v1207_v30 = vld [vmem:[%s1909_s6] ss:$0 sm:$0xff] }
  0x74   : > { %649 = vmatpush.msra.mxu0 %v614_v28  ;;  %777 = vmatpush.msra.mxu3 %v754_v56  ;;  %v789_v28 = vld [vmem:[#allocation10] sm:$0xff] }
  0x75   : > { %650 = vmatmul.f32.vlgmr.msra.gmra.mxu0 %v613_v29  ;;  %690 = vmatpush.msra.mxu1 %v655_v32  ;;  %v1206_v29 = vld [vmem:[%s1873_s12] ss:$0 sm:$0xff] }
  0x76   : > { %737 = vmatpush.msra.mxu2 %v712_v57  ;;  %778 = vmatpush.msra.mxu3 %v753_v58 }
  0x77   : > { %809 = vmatpush.msrb.mxu0 %v804_v5 }
  0x78   : > { %738 = vmatpush.msra.mxu2 %v711_v59  ;;  %779 = vmatpush.msra.mxu3 %v752_v60 }
  0x79   : > { %810 = vmatpush.msrb.mxu0 %v803_v6 }
  0x7a   : > { %739 = vmatpush.msra.mxu2 %v710_v61  ;;  %780 = vmatpush.msra.mxu3 %v751_v62 }
  0x7b   : > { %811 = vmatpush.msrb.mxu0 %v802_v7 }
  0x7c   : > { %740 = vmatpush.msra.mxu2 %v709_v63  ;;  %781 = vmatpush.msra.mxu3 %v750_v0 }
  0x7d   : > { %812 = vmatpush.msrb.mxu0 %v801_v8 }
  0x7e   : > { %741 = vmatpush.msra.mxu2 %v708_v1  ;;  %782 = vmatpush.msra.mxu3 %v749_v2 }
  0x7f   : > { %813 = vmatpush.msrb.mxu0 %v800_v9 }
  0x80   : > { %742 = vmatpush.msra.mxu2 %v707_v3  ;;  %783 = vmatpush.msra.mxu3 %v748_v4 }
  0x81   : > { %814 = vmatpush.msrb.mxu0 %v799_v10 }
  0x83   : > { %815 = vmatpush.msrb.mxu0 %v798_v11 }
  0x85   : > { %816 = vmatpush.msrb.mxu0 %v797_v12 }
  0x87   : > { %817 = vmatpush.msrb.mxu0 %v796_v13 }
  0x89   : > { %818 = vmatpush.msrb.mxu0 %v795_v15 }
  0x8b   : > { %819 = vmatpush.msrb.mxu0 %v794_v17 }
  0x8d   : > { %820 = vmatpush.msrb.mxu0 %v793_v19 }
  0x8f   : > { %821 = vmatpush.msrb.mxu0 %v792_v20 }
  0x91   : > { %822 = vmatpush.msrb.mxu0 %v791_v26 }
  0x93   : > { %823 = vmatpush.msrb.mxu0 %v790_v27 }
  0x95   : > { %824 = vmatpush.msrb.mxu0 %v789_v28 }
  0xf2   : > { %v651_v52 = vpop.f32.mrf.mxu0 }
  0xf3   : > { %v652_v53 = vadd.f32 %v1202_v51, %v651_v52 }
  0xf5   : > { %v654_v54 = vmax.f32 %v652_v53, 0.0 }
  0xf7   : > { %691 = vmatmul.f32.vlgmr.msra.gmra.mxu1 %v654_v54 }
 0x174   : > { %v692_v16 = vpop.f32.mrf.mxu1 }
 0x175   : > { %v693_v18 = vadd.f32 %v1203_v14, %v692_v16 }
 0x177   : > { %1209 = vtanh.f32 %v693_v18 }
 0x17d   : > { %v1210_v23 = vpop.eup %1209 }
 0x17e   : > { %v700_v24 = vmul.f32 %v1210_v23, %v1204_v21 }
 0x180   : > { %v705_v25 = vadd.f32 %v1205_v22, %v700_v24 }
 0x182   : > { %743 = vmatmul.f32.vlgmr.msra.gmra.mxu2 %v705_v25  ;;  %784 = vmatmul.f32.vlgmr.msra.gmra.mxu3 %v705_v25  ;;  %706 = vst [vmem:[%s1881_s8] sm:$0xff] %v705_v25  ;;  %s1411_s8 = scalar_lea.hbm %s1910_s17, 16 }
 0x183   : > { %p1413_p8 = scmp.lt.s32.totalorder %s1411_s8, %s1407_s11 }
 0x185   : > { %p1414_p7 = por %p1413_p8, %p1412_p12 }
 0x187   : > { %p1415_p9 = pnand %p1414_p7, %p1410_p5 }
 0x205   : > { %v744_v31 = vpop.f32.mrf.mxu2  ;;  %v785_v32 = vpop.f32.mrf.mxu3 }
 0x206   : > { %v745_v33 = vadd.f32 %v1206_v29, %v744_v31  ;;  %v786_v34 = vadd.f32 %v1207_v30, %v785_v32 }
 0x208   : > { %747 = vst [vmem:[%s605_s22] sm:$0xff] %v745_v33  ;;  %v788_v35 = vmax.f32 %v786_v34, 0.0 }
 0x20a   : > { %825 = vmatmul.f32.vlgmr.msrb.gmra.mxu0 %v788_v35 }
 0x20b   : > { %1418 = shalt.err (!%p1415_p9)
}
 0x20c   : > { %1116 = dma.vmem_to_hbm [thread:$0]  (%p1704_p13), %s868_s28, 128, %s870_s16, %s1792_s14  }
 0x20d   : > { %s1911_s24 = sld [smem:[#allocation35_spill]]  ;;  %s1912_s27 = scalar_lea.vmem [#allocation16], %s1740_s30 }
 0x20e   : > { %s881_s2 = sshll.u32 %s1912_s27, 4  ;;  %s882_s2 = int_to_ptr.vmem [resolvable:$true] %s881_s2 }
 0x213   : > { %s879_s26 = scalar_lea.hbm %s1911_s24, %s1784_s3  ;;  %s1439_s28 = scalar_lea.hbm %s1911_s24, 16 }
 0x214   : > { %s883_s0 = sshll.u32 %s879_s26, 4  ;;  %s884_s0 = int_to_ptr.hbm [resolvable:$true] %s883_s0 }
 0x215   : > { %s1433_s8 = sshra.s32 %s884_s0, 4  ;;  %s1434_s8 = int_to_ptr.hbm [resolvable:$true] %s1433_s8 }
 0x216   : > { %s1435_s7 = scalar_lea.hbm %s1434_s8, 8  ;;  %p1440_p2 = scmp.lt.s32.totalorder %s1434_s8, %s1911_s24 }
 0x217   : > { %p1436_p10 = scmp.ne.s32.totalorder %s1434_s8, %s1435_s7  ;;  %p1441_p6 = scmp.lt.s32.totalorder %s1439_s28, %s1435_s7 }
 0x219   : > { %p1437_p11 = pnand %p1436_p10, %p1704_p13  ;;  %p1442_p1 = por %p1441_p6, %p1440_p2 }
 0x21b   : > { %p1438_p0 = pneg %p1437_p11 }
 0x21d   : > { %p1443_p3 = pnand %p1442_p1, %p1438_p0 }
 0x21f   : > { %1446 = shalt.err (!%p1443_p3)
}
 0x220   : > { %1117 = dma.vmem_to_hbm [thread:$0]  (%p1704_p13), %s882_s2, 128, %s884_s0, %s1792_s14  }
 0x221   : > { %s1913_s26 = sld [smem:[#allocation33_spill]]  ;;  %s598_s8 = scalar_lea.vmem [#allocation13], %s1740_s30 }
 0x222   : > { %s1914_s4 = sld [smem:[#allocation31_spill]]  ;;  %s853_s7 = sshll.u32 %s598_s8, 4  ;;  %s854_s7 = int_to_ptr.vmem [resolvable:$true] %s853_s7 }
 0x223   : > { %s831_s16 = scalar_lea.sflag [#allocation4], %s1737_s15 }
 0x227   : > { %s851_s27 = scalar_lea.hbm %s1913_s26, %s1784_s3  ;;  %s1467_s0 = scalar_lea.hbm %s1913_s26, 16 }
 0x228   : > { %v1208_v36 = vld [vmem:[%s1914_s4] ss:$0 sm:$0xff]  ;;  %s855_s28 = sshll.u32 %s851_s27, 4  ;;  %s856_s28 = int_to_ptr.hbm [resolvable:$true] %s855_s28 }
 0x229   : > { %s1461_s6 = sshra.s32 %s856_s28, 4  ;;  %s1462_s6 = int_to_ptr.hbm [resolvable:$true] %s1461_s6 }
 0x22a   : > { %s1463_s2 = scalar_lea.hbm %s1462_s6, 8  ;;  %p1468_p7 = scmp.lt.s32.totalorder %s1462_s6, %s1913_s26 }
 0x22b   : > { %p1464_p5 = scmp.ne.s32.totalorder %s1462_s6, %s1463_s2  ;;  %p1469_p9 = scmp.lt.s32.totalorder %s1467_s0, %s1463_s2 }
 0x22d   : > { %p1465_p12 = pnand %p1464_p5, %p1704_p13  ;;  %p1470_p10 = por %p1469_p9, %p1468_p7 }
 0x22f   : > { %p1466_p8 = pneg %p1465_p12 }
 0x231   : > { %p1471_p11 = pnand %p1470_p10, %p1466_p8 }
 0x287   : > { %v826_v37 = vpop.f32.mrf.mxu0 }
 0x288   : > { %v827_v38 = vadd.f32 %v1208_v36, %v826_v37 }
 0x28a   : > { %829 = vst [vmem:[%s598_s8] sm:$0xff] %v827_v38 }
 0x28b   : > { %1474 = shalt.err (!%p1471_p11)
}
 0x28c   : > { %1115 = dma.vmem_to_hbm [thread:$0]  (%p1704_p13), %s854_s7, 128, %s856_s28, %s831_s16  }
 0x28d PF: > { %s895_s15 = sand.u32 1, %s1517_s18   ;;  %p1915_p0 = scmp.ge.s32.totalorder %s1529_s21, 2 }
 0x28e   : > { %s896_s22 = scalar_lea.sflag [#allocation4], %s895_s15 }
 0x28f   : > { %p1142_p2 = pnand %p1915_p0, %p1711_p4 }
 0x291   : > { %p1143_p6 = pneg %p1142_p2 }
 0x293   : > { %1508 = dma.done.wait (%p1143_p6), %s896_s22, 128  }
 0x294   : > { %1510 = vsyncadd (%p1143_p6), %s896_s22, 4294967168  ;;  %s1916_s6 = sadd.s32 4294967294, %s1529_s21  }
 0x295   : > { %s905_s27 = sand.u32 1, %s1916_s6  }
 0x296   : > { %s906_s11 = scalar_lea.sflag [#allocation15], %s905_s27 }
 0x297   : > { %1512 = dma.done.wait (%p1143_p6), %s906_s11, 256  }
 0x298   : > { %1514 = vsyncadd (%p1143_p6), %s906_s11, 4294967040  ;;  %p35_p13 = scmp.ge.s32.totalorder %s1684_s29, 4   ;;  %s1917_s18 = smov %s1521_s19 }
 0x299   : > { %s1918_s19 = smov %s1525_s20  ;;  %s1919_s20 = smov %s1696_s5 }
 0x29a   : > { %s1920_s21 = smov %s1684_s29  ;;  %37 = sbr.rel (!%p35_p13) target bundleno = 24 (0x18), region = 169 }
 0x29f   :  { %922 = vsyncpa [#allocation3], 1 }
 0x2a0   :  { %924 = vsyncpa [#allocation3 + $0x1], 1 }
 0x2a1   :  { %925 = vsyncpa [#allocation6], 1 }
 0x2a2   :  { %926 = vsyncpa [#allocation9], 1 }
 0x2a3   :  { %927 = vsyncpa [#allocation12], 1 }
 0x2a4   :  { %928 = vsyncpa [#allocation4], 1 }
 0x2a5   :  { %930 = vsyncpa [#allocation4 + $0x1], 1 }
 0x2a6   :  { %931 = vsyncpa [#allocation15], 1 }
 0x2a7   :  { %933 = vsyncpa [#allocation15 + $0x1], 1 }

</bundles_post_ra>
